<compile_context>
chip_gen: v7x
topology: tpu7x:2x2x1
jax: 0.10.0
libtpu: 0.0.40
codegen_flags: <defaults>
</compile_context>

<pallas_src>
import functools

import jax
import jax.numpy as jnp
from jax.experimental import pallas as pl
from jax.experimental.pallas import tpu as pltpu

HIDDEN = 32                      # hidden_size (module default 50; TPU-friendly small size)
VOCAB = 128                      # output_size == vocab.n_words
CHUNK = 8                        # decode steps fused per grid iteration
WPAD = max(4 * HIDDEN, VOCAB)    # common lane width of the packed weight slab (=128)
SLAB_ROWS = 3 * HIDDEN + 2       # [W_ih^T;W_hh^T] (2H) + W_fc^T (H) + b_gates (1) + b_fc (1)


def fused_decoder_kernel(chunk, t_total,
                         tok_ref,          # (T_pad,) int32 in SMEM (scalar prefetch)
                         emb_ref,          # (V, H) full embedding table, VMEM-resident
                         w_ref,            # (3H+2, WPAD) packed weights/biases, VMEM-resident
                         hc_init_ref,      # (2, H) initial [h; c]
                         logp_ref,         # (CHUNK, 1, V) per-chunk log-prob output block
                         hc_ref,           # (2, H) final [h; c] (written once, at the end)
                         hc_scr):          # (2, H) VMEM scratch carrying [h; c] across chunks
    H = HIDDEN
    V = VOCAB
    g = pl.program_id(0)

    # Load the initial hidden state into the persistent scratch on the first chunk.
    @pl.when(g == 0)
    def _():
        hc_scr[...] = hc_init_ref[...]

    # Static slices of the VMEM-resident weight slab (hoisted out of the step loop).
    w_gates = w_ref[0:2 * H, 0:4 * H]               # (2H, 4H) = [W_ih^T ; W_hh^T]
    w_fc    = w_ref[2 * H:3 * H, 0:V]               # (H, V)   = W_fc^T
    b_gates = w_ref[3 * H:3 * H + 1, 0:4 * H]       # (1, 4H)  = b_ih + b_hh
    b_fc    = w_ref[3 * H + 1:3 * H + 2, 0:V]       # (1, V)

    # Hoisted iota mask selecting the g-gate (tanh) lanes inside the (1, 4H) gate vreg.
    lane = jax.lax.broadcasted_iota(jnp.int32, (1, 4 * H), 1)
    is_g = (lane >= 2 * H) & (lane < 3 * H)

    # Pull the carried hidden state out of scratch once per chunk.
    h = hc_scr[0:1, :]            # (1, H)
    c = hc_scr[1:2, :]            # (1, H)

    needs_mask = (t_total % chunk) != 0   # static: mask updates on padded tail steps only

    # NOTE: F.relu(embedded) in the PyTorch forward is discarded; the LSTM consumes the raw
    # embedding, so no relu is applied here (exact semantics).
    for s in range(chunk):                              # fully unrolled inner step loop
        tok = tok_ref[g * chunk + s]                    # SMEM scalar read
        x = emb_ref[pl.ds(tok, 1), :]                   # (1, H) in-kernel row gather

        # Single gate matmul: [x, h] @ [W_ih^T ; W_hh^T] + (b_ih + b_hh) -> (1,4H), i,f,g,o.
        xh = jnp.concatenate([x, h], axis=-1)           # (1, 2H)
        gates = jnp.dot(xh, w_gates, preferred_element_type=jnp.float32) + b_gates

        # One full-width sigmoid EUP pass; tanh lanes recovered via tanh(x)=2*sigmoid(2x)-1.
        pre = jnp.where(is_g, gates + gates, gates)
        sg = jax.nn.sigmoid(pre)
        act = jnp.where(is_g, sg + sg - 1.0, sg)        # (1, 4H)

        i_g = act[:, 0:H]
        f_g = act[:, H:2 * H]
        g_g = act[:, 2 * H:3 * H]
        o_g = act[:, 3 * H:4 * H]

        c_new = f_g * c + i_g * g_g
        h_new = o_g * jnp.tanh(c_new)

        # fc + numerically stable log_softmax.
        logits = jnp.dot(h_new, w_fc, preferred_element_type=jnp.float32) + b_fc   # (1, V)
        m = jnp.max(logits, axis=-1, keepdims=True)
        z = logits - m
        lse = jnp.log(jnp.sum(jnp.exp(z), axis=-1, keepdims=True))
        logp_ref[s] = z - lse                           # static row index -> unmasked store

        if needs_mask:
            valid = (g * chunk + s) < t_total
            h = jnp.where(valid, h_new, h)
            c = jnp.where(valid, c_new, c)
        else:
            h, c = h_new, c_new

    # Write the carry back to scratch once per chunk.
    hc_scr[0:1, :] = h
    hc_scr[1:2, :] = c

    # Final hidden-state output is written exactly once.
    @pl.when(g == pl.num_programs(0) - 1)
    def _():
        hc_ref[...] = hc_scr[...]


# ----------------------------------------------------------------------------- glue / wrappers

def _pad_cols(a, width):
    return jnp.pad(a, ((0, 0), (0, width - a.shape[1])))


def pack_params(emb_w, w_ih, w_hh, b_ih, b_hh, w_fc, b_fc):
    """Pack PyTorch-shaped params into the kernel's two operands."""
    H, V = HIDDEN, VOCAB
    w_gates = jnp.concatenate([w_ih.T, w_hh.T], axis=0)                          # (2H, 4H)
    w_slab = jnp.concatenate([
        _pad_cols(w_gates.astype(jnp.float32), WPAD),                            # rows [0, 2H)
        _pad_cols(w_fc.T.astype(jnp.float32), WPAD),                             # rows [2H, 3H)
        _pad_cols((b_ih + b_hh).reshape(1, 4 * H).astype(jnp.float32), WPAD),    # row 3H
        _pad_cols(b_fc.reshape(1, V).astype(jnp.float32), WPAD),                 # row 3H+1
    ], axis=0)                                                                   # (3H+2, WPAD)
    return emb_w.astype(jnp.float32), w_slab                                     # (V,H), (3H+2,WPAD)


def decoder_rnn_decode(packed, tokens, hidden):
    """Run the DecoderRNN forward for every token in `tokens`, threading (h, c).

    Equivalent to calling the PyTorch module once per token with the evolving hidden state
    (teacher-forced decode), fused into a single pallas_call with CHUNK steps per grid point.
    """
    emb, w_slab = packed
    h0, c0 = hidden                                   # each (1, 1, H)
    T = int(tokens.shape[0])
    n_chunks = -(-T // CHUNK)
    T_pad = n_chunks * CHUNK

    toks = jnp.zeros((T_pad,), jnp.int32).at[:T].set(tokens.astype(jnp.int32))
    hc_init = jnp.concatenate(
        [h0.reshape(1, HIDDEN), c0.reshape(1, HIDDEN)], axis=0).astype(jnp.float32)

    kernel = functools.partial(fused_decoder_kernel, CHUNK, T)

    grid_spec = pltpu.PrefetchScalarGridSpec(
        num_scalar_prefetch=1,
        grid=(n_chunks,),
        in_specs=[
            # Full embedding table: constant block index -> VMEM-resident, DMA'd once.
            pl.BlockSpec((VOCAB, HIDDEN), lambda g, toks: (0, 0)),
            # Packed weights/biases: constant block index -> VMEM-resident for the whole decode.
            pl.BlockSpec((SLAB_ROWS, WPAD), lambda g, toks: (0, 0)),
            # Initial hidden state: resident, read once at g == 0.
            pl.BlockSpec((2, HIDDEN), lambda g, toks: (0, 0)),
        ],
        out_specs=(
            # Per-chunk log-probs (lane-dense last dim = V, CHUNK rows per writeback).
            pl.BlockSpec((CHUNK, 1, VOCAB), lambda g, toks: (g, 0, 0)),
            # Final [h; c]: constant block index, written once at the last grid step.
            pl.BlockSpec((2, HIDDEN), lambda g, toks: (0, 0)),
        ),
        scratch_shapes=[pltpu.VMEM((2, HIDDEN), jnp.float32)],
    )

    logp3, hc = pl.pallas_call(
        kernel,
        out_shape=(
            jax.ShapeDtypeStruct((T_pad, 1, VOCAB), jnp.float32),
            jax.ShapeDtypeStruct((2, HIDDEN), jnp.float32),
        ),
        grid_spec=grid_spec,
        compiler_params=pltpu.CompilerParams(dimension_semantics=("arbitrary",)),
    )(toks, emb, w_slab, hc_init)

    logp = logp3[:T].reshape(T, VOCAB)
    h_new = hc[0:1].reshape(1, 1, HIDDEN)
    c_new = hc[1:2].reshape(1, 1, HIDDEN)
    return logp, (h_new, c_new)


def decoder_rnn_forward(packed, token, hidden):
    """Exact single-step equivalent of DecoderRNN.forward (T == 1)."""
    logp, hid = decoder_rnn_decode(packed, jnp.reshape(token, (1,)).astype(jnp.int32), hidden)
    return logp, hid   # logp: (1, V); hid: ((1,1,H), (1,1,H))


# ----------------------------------------------------------------------------- reference & init

def init_raw_params(key):
    """Deterministic synthetic parameters matching the PyTorch module's shapes."""
    ks = jax.random.split(key, 7)
    bound = 1.0 / jnp.sqrt(jnp.float32(HIDDEN))
    emb_w = jax.random.normal(ks[0], (VOCAB, HIDDEN), jnp.float32)                      # nn.Embedding
    w_ih = jax.random.uniform(ks[1], (4 * HIDDEN, HIDDEN), jnp.float32, -bound, bound)  # lstm.weight_ih
    w_hh = jax.random.uniform(ks[2], (4 * HIDDEN, HIDDEN), jnp.float32, -bound, bound)  # lstm.weight_hh
    b_ih = jax.random.uniform(ks[3], (4 * HIDDEN,), jnp.float32, -bound, bound)
    b_hh = jax.random.uniform(ks[4], (4 * HIDDEN,), jnp.float32, -bound, bound)
    w_fc = jax.random.uniform(ks[5], (VOCAB, HIDDEN), jnp.float32, -bound, bound)       # fc.weight
    b_fc = jax.random.uniform(ks[6], (VOCAB,), jnp.float32, -bound, bound)              # fc.bias
    return emb_w, w_ih, w_hh, b_ih, b_hh, w_fc, b_fc


def _reference_decode(raw, tokens, hidden):
    """Pure-JAX reference with the exact PyTorch LSTM/Linear/LogSoftmax semantics."""
    emb_w, w_ih, w_hh, b_ih, b_hh, w_fc, b_fc = raw
    h = hidden[0].reshape(1, HIDDEN)
    c = hidden[1].reshape(1, HIDDEN)
    hi = jax.lax.Precision.HIGHEST
    outs = []
    for tok in tokens:
        x = emb_w[tok].reshape(1, HIDDEN)
        gates = (jnp.dot(x, w_ih.T, precision=hi) + b_ih
                 + jnp.dot(h, w_hh.T, precision=hi) + b_hh)
        i_g = jax.nn.sigmoid(gates[:, 0:HIDDEN])
        f_g = jax.nn.sigmoid(gates[:, HIDDEN:2 * HIDDEN])
        g_g = jnp.tanh(gates[:, 2 * HIDDEN:3 * HIDDEN])
        o_g = jax.nn.sigmoid(gates[:, 3 * HIDDEN:4 * HIDDEN])
        c = f_g * c + i_g * g_g
        h = o_g * jnp.tanh(c)
        logits = jnp.dot(h, w_fc.T, precision=hi) + b_fc
        outs.append(jax.nn.log_softmax(logits, axis=1))
    return jnp.concatenate(outs, axis=0), (h.reshape(1, 1, HIDDEN), c.reshape(1, 1, HIDDEN))


if __name__ == "__main__":
    key = jax.random.PRNGKey(0)
    pkey, hkey, ckey, tkey = jax.random.split(key, 4)

    raw = init_raw_params(pkey)
    packed = pack_params(*raw)

    T = 12   # not a multiple of CHUNK on purpose: exercises the padded-tail masking path
    tokens = jax.random.randint(tkey, (T,), 0, VOCAB, dtype=jnp.int32)
    h0 = jax.random.normal(hkey, (1, 1, HIDDEN), jnp.float32)
    c0 = jax.random.normal(ckey, (1, 1, HIDDEN), jnp.float32)

    # Fused multi-step decode (one pallas_call, CHUNK steps per grid iteration).
    decode = jax.jit(decoder_rnn_decode)
    logp, (h1, c1) = decode(packed, tokens, (h0, c0))
    jax.block_until_ready((logp, h1, c1))

    assert logp.shape == (T, VOCAB)
    assert h1.shape == (1, 1, HIDDEN) and c1.shape == (1, 1, HIDDEN)
    # log-probs sanity: each row exponentiates to a distribution.
    assert bool(jnp.allclose(jnp.sum(jnp.exp(logp), axis=-1), 1.0, atol=1e-3))

    # Numerics vs pure-JAX reference (same params, same step semantics).
    ref_logp, (ref_h1, ref_c1) = _reference_decode(raw, tokens, (h0, c0))
    assert bool(jnp.allclose(logp, ref_logp, atol=5e-3, rtol=5e-3))
    assert bool(jnp.allclose(h1, ref_h1, atol=5e-3, rtol=5e-3))
    assert bool(jnp.allclose(c1, ref_c1, atol=5e-3, rtol=5e-3))

    # Single-step entry point matching DecoderRNN.forward exactly.
    logp1, (h_s, c_s) = decoder_rnn_forward(packed, jnp.array(3, dtype=jnp.int32), (h0, c0))
    jax.block_until_ready((logp1, h_s, c_s))
    assert logp1.shape == (1, VOCAB)
    assert h_s.shape == (1, 1, HIDDEN) and c_s.shape == (1, 1, HIDDEN)
    ref_logp1, (ref_hs, ref_cs) = _reference_decode(raw, jnp.array([3], dtype=jnp.int32), (h0, c0))
    assert bool(jnp.allclose(logp1, ref_logp1, atol=5e-3, rtol=5e-3))
    assert bool(jnp.allclose(h_s, ref_hs, atol=5e-3, rtol=5e-3))
    assert bool(jnp.allclose(c_s, ref_cs, atol=5e-3, rtol=5e-3))

    print("KERNEL_OK")
</pallas_src>

<mosaic_0001>
module attributes {stable_mosaic.version = 11 : i64} {
  func.func @fused_decoder_kernel(%arg0: i32, %arg1: memref<16xi32, #tpu.memory_space<smem>>, %arg2: memref<128x32xf32, #tpu.memory_space<vmem>>, %arg3: memref<98x128xf32, #tpu.memory_space<vmem>>, %arg4: memref<2x32xf32, #tpu.memory_space<vmem>>, %arg5: memref<8x1x128xf32, #tpu.memory_space<vmem>>, %arg6: memref<2x32xf32, #tpu.memory_space<vmem>>, %arg7: memref<2x32xf32, #tpu.memory_space<vmem>>) attributes {dimension_semantics = [#tpu.dimension_semantics<arbitrary>], iteration_bounds = array<i64: 2>, scalar_prefetch = 1 : i64, scratch_operands = 1 : i64, tpu.core_type = #tpu.core_type<tc>, window_params = [{pipeline_mode = #tpu.pipeline_mode<synchronous>, transform_indices = @transform_0, window_bounds = array<i64: 128, 32>}, {pipeline_mode = #tpu.pipeline_mode<synchronous>, transform_indices = @transform_1, window_bounds = array<i64: 98, 128>}, {pipeline_mode = #tpu.pipeline_mode<synchronous>, transform_indices = @transform_2, window_bounds = array<i64: 2, 32>}, {transform_indices = @transform_3, window_bounds = array<i64: 8, 1, 128>}, {pipeline_mode = #tpu.pipeline_mode<synchronous>, transform_indices = @transform_4, window_bounds = array<i64: 2, 32>}]} {
    %c0_i32 = arith.constant 0 : i32
    %0 = arith.cmpi eq, %arg0, %c0_i32 : i32
    %1 = arith.extui %0 : i1 to i32
    %c0_i32_0 = arith.constant 0 : i32
    %2 = arith.cmpi ne, %1, %c0_i32_0 : i32
    scf.if %2 {
      %c0_118 = arith.constant 0 : index
      %c0_119 = arith.constant 0 : index
      %412 = vector.load %arg4[%c0_118, %c0_119] : memref<2x32xf32, #tpu.memory_space<vmem>>, vector<2x32xf32>
      %c0_120 = arith.constant 0 : index
      %c0_121 = arith.constant 0 : index
      %413 = vector.load %arg7[%c0_120, %c0_121] : memref<2x32xf32, #tpu.memory_space<vmem>>, vector<2x32xf32>
      tpu.vector_store %arg7[%c0_120, %c0_121], %412 {strides = array<i32>} : memref<2x32xf32, #tpu.memory_space<vmem>>, vector<2x32xf32>,
    } else {
    }
    %c0 = arith.constant 0 : index
    %c0_1 = arith.constant 0 : index
    %3 = vector.load %arg3[%c0, %c0_1] : memref<98x128xf32, #tpu.memory_space<vmem>>, vector<64x128xf32>
    %c64 = arith.constant 64 : index
    %c0_2 = arith.constant 0 : index
    %4 = vector.load %arg3[%c64, %c0_2] : memref<98x128xf32, #tpu.memory_space<vmem>>, vector<32x128xf32>
    %c96 = arith.constant 96 : index
    %c0_3 = arith.constant 0 : index
    %5 = vector.load %arg3[%c96, %c0_3] : memref<98x128xf32, #tpu.memory_space<vmem>>, vector<1x128xf32>
    %c97 = arith.constant 97 : index
    %c0_4 = arith.constant 0 : index
    %6 = vector.load %arg3[%c97, %c0_4] : memref<98x128xf32, #tpu.memory_space<vmem>>, vector<1x128xf32>
    %7 = tpu.iota {dimensions = array<i32: 1>} : vector<1x128xi32>
    %c64_i32 = arith.constant 64 : i32
    %8 = vector.broadcast %c64_i32 : i32 to vector<1x128xi32>
    %9 = arith.cmpi sge, %7, %8 : vector<1x128xi32>
    %c96_i32 = arith.constant 96 : i32
    %10 = vector.broadcast %c96_i32 : i32 to vector<1x128xi32>
    %11 = arith.cmpi slt, %7, %10 : vector<1x128xi32>
    %12 = arith.andi %9, %11 : vector<1x128xi1>
    %c0_5 = arith.constant 0 : index
    %c0_6 = arith.constant 0 : index
    %13 = vector.load %arg7[%c0_5, %c0_6] : memref<2x32xf32, #tpu.memory_space<vmem>>, vector<1x32xf32>
    %c1 = arith.constant 1 : index
    %c0_7 = arith.constant 0 : index
    %14 = vector.load %arg7[%c1, %c0_7] : memref<2x32xf32, #tpu.memory_space<vmem>>, vector<1x32xf32>
    %c8_i32 = arith.constant 8 : i32
    %15 = arith.muli %arg0, %c8_i32 : i32
    %c0_i32_8 = arith.constant 0 : i32
    %16 = arith.addi %15, %c0_i32_8 : i32
    %17 = arith.index_cast %16 : i32 to index
    %18 = memref.load %arg1[%17] : memref<16xi32, #tpu.memory_space<smem>>
    %19 = arith.index_cast %18 : i32 to index
    %c0_9 = arith.constant 0 : index
    %20 = vector.load %arg2[%19, %c0_9] : memref<128x32xf32, #tpu.memory_space<vmem>>, vector<1x32xf32>
    %21 = tpu.concatenate %20, %13 in 1 : vector<1x32xf32>, vector<1x32xf32> -> vector<1x64xf32>
    %cst = arith.constant dense<0.000000e+00> : vector<1x128xf32>
    %22 = tpu.matmul %21, %3, %cst {dimension_numbers = #tpu.dot_dimension_numbers<[1], [0], [0], [1], [0, 0, 1, 1], [], []>} : vector<1x64xf32>, vector<64x128xf32>, vector<1x128xf32> -> vector<1x128xf32>
    %23 = arith.addf %22, %5 : vector<1x128xf32>
    %24 = arith.addf %23, %23 : vector<1x128xf32>
    %25 = arith.select %12, %24, %23 : vector<1x128xi1>, vector<1x128xf32>
    %26 = arith.negf %25 : vector<1x128xf32>
    %27 = math.exp %26 : vector<1x128xf32>
    %cst_10 = arith.constant 1.000000e+00 : f32
    %28 = vector.broadcast %cst_10 : f32 to vector<1x128xf32>
    %29 = arith.addf %28, %27 : vector<1x128xf32>
    %30 = arith.divf %28, %29 : vector<1x128xf32>
    %31 = arith.addf %30, %30 : vector<1x128xf32>
    %cst_11 = arith.constant 1.000000e+00 : f32
    %32 = vector.broadcast %cst_11 : f32 to vector<1x128xf32>
    %33 = arith.subf %31, %32 : vector<1x128xf32>
    %34 = arith.select %12, %33, %30 : vector<1x128xi1>, vector<1x128xf32>
    %35 = vector.extract_strided_slice %34 {offsets = [0, 0], sizes = [1, 32], strides = [1, 1]} : vector<1x128xf32> to vector<1x32xf32>
    %36 = vector.extract_strided_slice %34 {offsets = [0, 32], sizes = [1, 32], strides = [1, 1]} : vector<1x128xf32> to vector<1x32xf32>
    %37 = vector.extract_strided_slice %34 {offsets = [0, 64], sizes = [1, 32], strides = [1, 1]} : vector<1x128xf32> to vector<1x32xf32>
    %38 = vector.extract_strided_slice %34 {offsets = [0, 96], sizes = [1, 32], strides = [1, 1]} : vector<1x128xf32> to vector<1x32xf32>
    %39 = arith.mulf %36, %14 : vector<1x32xf32>
    %40 = arith.mulf %35, %37 : vector<1x32xf32>
    %41 = arith.addf %39, %40 : vector<1x32xf32>
    %42 = math.tanh %41 : vector<1x32xf32>
    %43 = arith.mulf %38, %42 : vector<1x32xf32>
    %cst_12 = arith.constant dense<0.000000e+00> : vector<1x128xf32>
    %44 = tpu.matmul %43, %4, %cst_12 {dimension_numbers = #tpu.dot_dimension_numbers<[1], [0], [0], [1], [0, 0, 1, 1], [], []>} : vector<1x32xf32>, vector<32x128xf32>, vector<1x128xf32> -> vector<1x128xf32>
    %45 = arith.addf %44, %6 : vector<1x128xf32>
    %cst_13 = arith.constant dense<0xFF800000> : vector<1xf32>
    %46 = vector.multi_reduction <maximumf>, %45, %cst_13 [1] : vector<1x128xf32> to vector<1xf32>
    %47 = vector.shape_cast %46 : vector<1xf32> to vector<1x1xf32>
    %48 = vector.broadcast %47 : vector<1x1xf32> to vector<1x128xf32>
    %49 = arith.subf %45, %48 : vector<1x128xf32>
    %50 = math.exp %49 : vector<1x128xf32>
    %cst_14 = arith.constant dense<0.000000e+00> : vector<1xf32>
    %51 = vector.multi_reduction <add>, %50, %cst_14 [1] : vector<1x128xf32> to vector<1xf32>
    %52 = vector.shape_cast %51 : vector<1xf32> to vector<1x1xf32>
    %53 = math.log %52 : vector<1x1xf32>
    %54 = vector.broadcast %53 : vector<1x1xf32> to vector<1x128xf32>
    %55 = arith.subf %49, %54 : vector<1x128xf32>
    %c0_15 = arith.constant 0 : index
    %c0_16 = arith.constant 0 : index
    %c0_17 = arith.constant 0 : index
    %56 = vector.load %arg5[%c0_15, %c0_16, %c0_17] : memref<8x1x128xf32, #tpu.memory_space<vmem>>, vector<1x1x128xf32>
    %57 = vector.shape_cast %56 : vector<1x1x128xf32> to vector<1x128xf32>
    %58 = vector.shape_cast %55 : vector<1x128xf32> to vector<1x1x128xf32>
    tpu.vector_store %arg5[%c0_15, %c0_16, %c0_17], %58 {strides = array<i32>} : memref<8x1x128xf32, #tpu.memory_space<vmem>>, vector<1x1x128xf32>,
    %c8_i32_18 = arith.constant 8 : i32
    %59 = arith.muli %arg0, %c8_i32_18 : i32
    %c0_i32_19 = arith.constant 0 : i32
    %60 = arith.addi %59, %c0_i32_19 : i32
    %c12_i32 = arith.constant 12 : i32
    %61 = arith.cmpi slt, %60, %c12_i32 : i32
    %62 = arith.select %61, %43, %13 : vector<1x32xf32>
    %63 = arith.select %61, %41, %14 : vector<1x32xf32>
    %c8_i32_20 = arith.constant 8 : i32
    %64 = arith.muli %arg0, %c8_i32_20 : i32
    %c1_i32 = arith.constant 1 : i32
    %65 = arith.addi %64, %c1_i32 : i32
    %66 = arith.index_cast %65 : i32 to index
    %67 = memref.load %arg1[%66] : memref<16xi32, #tpu.memory_space<smem>>
    %68 = arith.index_cast %67 : i32 to index
    %c0_21 = arith.constant 0 : index
    %69 = vector.load %arg2[%68, %c0_21] : memref<128x32xf32, #tpu.memory_space<vmem>>, vector<1x32xf32>
    %70 = tpu.concatenate %69, %62 in 1 : vector<1x32xf32>, vector<1x32xf32> -> vector<1x64xf32>
    %cst_22 = arith.constant dense<0.000000e+00> : vector<1x128xf32>
    %71 = tpu.matmul %70, %3, %cst_22 {dimension_numbers = #tpu.dot_dimension_numbers<[1], [0], [0], [1], [0, 0, 1, 1], [], []>} : vector<1x64xf32>, vector<64x128xf32>, vector<1x128xf32> -> vector<1x128xf32>
    %72 = arith.addf %71, %5 : vector<1x128xf32>
    %73 = arith.addf %72, %72 : vector<1x128xf32>
    %74 = arith.select %12, %73, %72 : vector<1x128xi1>, vector<1x128xf32>
    %75 = arith.negf %74 : vector<1x128xf32>
    %76 = math.exp %75 : vector<1x128xf32>
    %cst_23 = arith.constant 1.000000e+00 : f32
    %77 = vector.broadcast %cst_23 : f32 to vector<1x128xf32>
    %78 = arith.addf %77, %76 : vector<1x128xf32>
    %79 = arith.divf %77, %78 : vector<1x128xf32>
    %80 = arith.addf %79, %79 : vector<1x128xf32>
    %cst_24 = arith.constant 1.000000e+00 : f32
    %81 = vector.broadcast %cst_24 : f32 to vector<1x128xf32>
    %82 = arith.subf %80, %81 : vector<1x128xf32>
    %83 = arith.select %12, %82, %79 : vector<1x128xi1>, vector<1x128xf32>
    %84 = vector.extract_strided_slice %83 {offsets = [0, 0], sizes = [1, 32], strides = [1, 1]} : vector<1x128xf32> to vector<1x32xf32>
    %85 = vector.extract_strided_slice %83 {offsets = [0, 32], sizes = [1, 32], strides = [1, 1]} : vector<1x128xf32> to vector<1x32xf32>
    %86 = vector.extract_strided_slice %83 {offsets = [0, 64], sizes = [1, 32], strides = [1, 1]} : vector<1x128xf32> to vector<1x32xf32>
    %87 = vector.extract_strided_slice %83 {offsets = [0, 96], sizes = [1, 32], strides = [1, 1]} : vector<1x128xf32> to vector<1x32xf32>
    %88 = arith.mulf %85, %63 : vector<1x32xf32>
    %89 = arith.mulf %84, %86 : vector<1x32xf32>
    %90 = arith.addf %88, %89 : vector<1x32xf32>
    %91 = math.tanh %90 : vector<1x32xf32>
    %92 = arith.mulf %87, %91 : vector<1x32xf32>
    %cst_25 = arith.constant dense<0.000000e+00> : vector<1x128xf32>
    %93 = tpu.matmul %92, %4, %cst_25 {dimension_numbers = #tpu.dot_dimension_numbers<[1], [0], [0], [1], [0, 0, 1, 1], [], []>} : vector<1x32xf32>, vector<32x128xf32>, vector<1x128xf32> -> vector<1x128xf32>
    %94 = arith.addf %93, %6 : vector<1x128xf32>
    %cst_26 = arith.constant dense<0xFF800000> : vector<1xf32>
    %95 = vector.multi_reduction <maximumf>, %94, %cst_26 [1] : vector<1x128xf32> to vector<1xf32>
    %96 = vector.shape_cast %95 : vector<1xf32> to vector<1x1xf32>
    %97 = vector.broadcast %96 : vector<1x1xf32> to vector<1x128xf32>
    %98 = arith.subf %94, %97 : vector<1x128xf32>
    %99 = math.exp %98 : vector<1x128xf32>
    %cst_27 = arith.constant dense<0.000000e+00> : vector<1xf32>
    %100 = vector.multi_reduction <add>, %99, %cst_27 [1] : vector<1x128xf32> to vector<1xf32>
    %101 = vector.shape_cast %100 : vector<1xf32> to vector<1x1xf32>
    %102 = math.log %101 : vector<1x1xf32>
    %103 = vector.broadcast %102 : vector<1x1xf32> to vector<1x128xf32>
    %104 = arith.subf %98, %103 : vector<1x128xf32>
    %c1_28 = arith.constant 1 : index
    %c0_29 = arith.constant 0 : index
    %c0_30 = arith.constant 0 : index
    %105 = vector.load %arg5[%c1_28, %c0_29, %c0_30] : memref<8x1x128xf32, #tpu.memory_space<vmem>>, vector<1x1x128xf32>
    %106 = vector.shape_cast %105 : vector<1x1x128xf32> to vector<1x128xf32>
    %107 = vector.shape_cast %104 : vector<1x128xf32> to vector<1x1x128xf32>
    tpu.vector_store %arg5[%c1_28, %c0_29, %c0_30], %107 {strides = array<i32>} : memref<8x1x128xf32, #tpu.memory_space<vmem>>, vector<1x1x128xf32>,
    %c8_i32_31 = arith.constant 8 : i32
    %108 = arith.muli %arg0, %c8_i32_31 : i32
    %c1_i32_32 = arith.constant 1 : i32
    %109 = arith.addi %108, %c1_i32_32 : i32
    %c12_i32_33 = arith.constant 12 : i32
    %110 = arith.cmpi slt, %109, %c12_i32_33 : i32
    %111 = arith.select %110, %92, %62 : vector<1x32xf32>
    %112 = arith.select %110, %90, %63 : vector<1x32xf32>
    %c8_i32_34 = arith.constant 8 : i32
    %113 = arith.muli %arg0, %c8_i32_34 : i32
    %c2_i32 = arith.constant 2 : i32
    %114 = arith.addi %113, %c2_i32 : i32
    %115 = arith.index_cast %114 : i32 to index
    %116 = memref.load %arg1[%115] : memref<16xi32, #tpu.memory_space<smem>>
    %117 = arith.index_cast %116 : i32 to index
    %c0_35 = arith.constant 0 : index
    %118 = vector.load %arg2[%117, %c0_35] : memref<128x32xf32, #tpu.memory_space<vmem>>, vector<1x32xf32>
    %119 = tpu.concatenate %118, %111 in 1 : vector<1x32xf32>, vector<1x32xf32> -> vector<1x64xf32>
    %cst_36 = arith.constant dense<0.000000e+00> : vector<1x128xf32>
    %120 = tpu.matmul %119, %3, %cst_36 {dimension_numbers = #tpu.dot_dimension_numbers<[1], [0], [0], [1], [0, 0, 1, 1], [], []>} : vector<1x64xf32>, vector<64x128xf32>, vector<1x128xf32> -> vector<1x128xf32>
    %121 = arith.addf %120, %5 : vector<1x128xf32>
    %122 = arith.addf %121, %121 : vector<1x128xf32>
    %123 = arith.select %12, %122, %121 : vector<1x128xi1>, vector<1x128xf32>
    %124 = arith.negf %123 : vector<1x128xf32>
    %125 = math.exp %124 : vector<1x128xf32>
    %cst_37 = arith.constant 1.000000e+00 : f32
    %126 = vector.broadcast %cst_37 : f32 to vector<1x128xf32>
    %127 = arith.addf %126, %125 : vector<1x128xf32>
    %128 = arith.divf %126, %127 : vector<1x128xf32>
    %129 = arith.addf %128, %128 : vector<1x128xf32>
    %cst_38 = arith.constant 1.000000e+00 : f32
    %130 = vector.broadcast %cst_38 : f32 to vector<1x128xf32>
    %131 = arith.subf %129, %130 : vector<1x128xf32>
    %132 = arith.select %12, %131, %128 : vector<1x128xi1>, vector<1x128xf32>
    %133 = vector.extract_strided_slice %132 {offsets = [0, 0], sizes = [1, 32], strides = [1, 1]} : vector<1x128xf32> to vector<1x32xf32>
    %134 = vector.extract_strided_slice %132 {offsets = [0, 32], sizes = [1, 32], strides = [1, 1]} : vector<1x128xf32> to vector<1x32xf32>
    %135 = vector.extract_strided_slice %132 {offsets = [0, 64], sizes = [1, 32], strides = [1, 1]} : vector<1x128xf32> to vector<1x32xf32>
    %136 = vector.extract_strided_slice %132 {offsets = [0, 96], sizes = [1, 32], strides = [1, 1]} : vector<1x128xf32> to vector<1x32xf32>
    %137 = arith.mulf %134, %112 : vector<1x32xf32>
    %138 = arith.mulf %133, %135 : vector<1x32xf32>
    %139 = arith.addf %137, %138 : vector<1x32xf32>
    %140 = math.tanh %139 : vector<1x32xf32>
    %141 = arith.mulf %136, %140 : vector<1x32xf32>
    %cst_39 = arith.constant dense<0.000000e+00> : vector<1x128xf32>
    %142 = tpu.matmul %141, %4, %cst_39 {dimension_numbers = #tpu.dot_dimension_numbers<[1], [0], [0], [1], [0, 0, 1, 1], [], []>} : vector<1x32xf32>, vector<32x128xf32>, vector<1x128xf32> -> vector<1x128xf32>
    %143 = arith.addf %142, %6 : vector<1x128xf32>
    %cst_40 = arith.constant dense<0xFF800000> : vector<1xf32>
    %144 = vector.multi_reduction <maximumf>, %143, %cst_40 [1] : vector<1x128xf32> to vector<1xf32>
    %145 = vector.shape_cast %144 : vector<1xf32> to vector<1x1xf32>
    %146 = vector.broadcast %145 : vector<1x1xf32> to vector<1x128xf32>
    %147 = arith.subf %143, %146 : vector<1x128xf32>
    %148 = math.exp %147 : vector<1x128xf32>
    %cst_41 = arith.constant dense<0.000000e+00> : vector<1xf32>
    %149 = vector.multi_reduction <add>, %148, %cst_41 [1] : vector<1x128xf32> to vector<1xf32>
    %150 = vector.shape_cast %149 : vector<1xf32> to vector<1x1xf32>
    %151 = math.log %150 : vector<1x1xf32>
    %152 = vector.broadcast %151 : vector<1x1xf32> to vector<1x128xf32>
    %153 = arith.subf %147, %152 : vector<1x128xf32>
    %c2 = arith.constant 2 : index
    %c0_42 = arith.constant 0 : index
    %c0_43 = arith.constant 0 : index
    %154 = vector.load %arg5[%c2, %c0_42, %c0_43] : memref<8x1x128xf32, #tpu.memory_space<vmem>>, vector<1x1x128xf32>
    %155 = vector.shape_cast %154 : vector<1x1x128xf32> to vector<1x128xf32>
    %156 = vector.shape_cast %153 : vector<1x128xf32> to vector<1x1x128xf32>
    tpu.vector_store %arg5[%c2, %c0_42, %c0_43], %156 {strides = array<i32>} : memref<8x1x128xf32, #tpu.memory_space<vmem>>, vector<1x1x128xf32>,
    %c8_i32_44 = arith.constant 8 : i32
    %157 = arith.muli %arg0, %c8_i32_44 : i32
    %c2_i32_45 = arith.constant 2 : i32
    %158 = arith.addi %157, %c2_i32_45 : i32
    %c12_i32_46 = arith.constant 12 : i32
    %159 = arith.cmpi slt, %158, %c12_i32_46 : i32
    %160 = arith.select %159, %141, %111 : vector<1x32xf32>
    %161 = arith.select %159, %139, %112 : vector<1x32xf32>
    %c8_i32_47 = arith.constant 8 : i32
    %162 = arith.muli %arg0, %c8_i32_47 : i32
    %c3_i32 = arith.constant 3 : i32
    %163 = arith.addi %162, %c3_i32 : i32
    %164 = arith.index_cast %163 : i32 to index
    %165 = memref.load %arg1[%164] : memref<16xi32, #tpu.memory_space<smem>>
    %166 = arith.index_cast %165 : i32 to index
    %c0_48 = arith.constant 0 : index
    %167 = vector.load %arg2[%166, %c0_48] : memref<128x32xf32, #tpu.memory_space<vmem>>, vector<1x32xf32>
    %168 = tpu.concatenate %167, %160 in 1 : vector<1x32xf32>, vector<1x32xf32> -> vector<1x64xf32>
    %cst_49 = arith.constant dense<0.000000e+00> : vector<1x128xf32>
    %169 = tpu.matmul %168, %3, %cst_49 {dimension_numbers = #tpu.dot_dimension_numbers<[1], [0], [0], [1], [0, 0, 1, 1], [], []>} : vector<1x64xf32>, vector<64x128xf32>, vector<1x128xf32> -> vector<1x128xf32>
    %170 = arith.addf %169, %5 : vector<1x128xf32>
    %171 = arith.addf %170, %170 : vector<1x128xf32>
    %172 = arith.select %12, %171, %170 : vector<1x128xi1>, vector<1x128xf32>
    %173 = arith.negf %172 : vector<1x128xf32>
    %174 = math.exp %173 : vector<1x128xf32>
    %cst_50 = arith.constant 1.000000e+00 : f32
    %175 = vector.broadcast %cst_50 : f32 to vector<1x128xf32>
    %176 = arith.addf %175, %174 : vector<1x128xf32>
    %177 = arith.divf %175, %176 : vector<1x128xf32>
    %178 = arith.addf %177, %177 : vector<1x128xf32>
    %cst_51 = arith.constant 1.000000e+00 : f32
    %179 = vector.broadcast %cst_51 : f32 to vector<1x128xf32>
    %180 = arith.subf %178, %179 : vector<1x128xf32>
    %181 = arith.select %12, %180, %177 : vector<1x128xi1>, vector<1x128xf32>
    %182 = vector.extract_strided_slice %181 {offsets = [0, 0], sizes = [1, 32], strides = [1, 1]} : vector<1x128xf32> to vector<1x32xf32>
    %183 = vector.extract_strided_slice %181 {offsets = [0, 32], sizes = [1, 32], strides = [1, 1]} : vector<1x128xf32> to vector<1x32xf32>
    %184 = vector.extract_strided_slice %181 {offsets = [0, 64], sizes = [1, 32], strides = [1, 1]} : vector<1x128xf32> to vector<1x32xf32>
    %185 = vector.extract_strided_slice %181 {offsets = [0, 96], sizes = [1, 32], strides = [1, 1]} : vector<1x128xf32> to vector<1x32xf32>
    %186 = arith.mulf %183, %161 : vector<1x32xf32>
    %187 = arith.mulf %182, %184 : vector<1x32xf32>
    %188 = arith.addf %186, %187 : vector<1x32xf32>
    %189 = math.tanh %188 : vector<1x32xf32>
    %190 = arith.mulf %185, %189 : vector<1x32xf32>
    %cst_52 = arith.constant dense<0.000000e+00> : vector<1x128xf32>
    %191 = tpu.matmul %190, %4, %cst_52 {dimension_numbers = #tpu.dot_dimension_numbers<[1], [0], [0], [1], [0, 0, 1, 1], [], []>} : vector<1x32xf32>, vector<32x128xf32>, vector<1x128xf32> -> vector<1x128xf32>
    %192 = arith.addf %191, %6 : vector<1x128xf32>
    %cst_53 = arith.constant dense<0xFF800000> : vector<1xf32>
    %193 = vector.multi_reduction <maximumf>, %192, %cst_53 [1] : vector<1x128xf32> to vector<1xf32>
    %194 = vector.shape_cast %193 : vector<1xf32> to vector<1x1xf32>
    %195 = vector.broadcast %194 : vector<1x1xf32> to vector<1x128xf32>
    %196 = arith.subf %192, %195 : vector<1x128xf32>
    %197 = math.exp %196 : vector<1x128xf32>
    %cst_54 = arith.constant dense<0.000000e+00> : vector<1xf32>
    %198 = vector.multi_reduction <add>, %197, %cst_54 [1] : vector<1x128xf32> to vector<1xf32>
    %199 = vector.shape_cast %198 : vector<1xf32> to vector<1x1xf32>
    %200 = math.log %199 : vector<1x1xf32>
    %201 = vector.broadcast %200 : vector<1x1xf32> to vector<1x128xf32>
    %202 = arith.subf %196, %201 : vector<1x128xf32>
    %c3 = arith.constant 3 : index
    %c0_55 = arith.constant 0 : index
    %c0_56 = arith.constant 0 : index
    %203 = vector.load %arg5[%c3, %c0_55, %c0_56] : memref<8x1x128xf32, #tpu.memory_space<vmem>>, vector<1x1x128xf32>
    %204 = vector.shape_cast %203 : vector<1x1x128xf32> to vector<1x128xf32>
    %205 = vector.shape_cast %202 : vector<1x128xf32> to vector<1x1x128xf32>
    tpu.vector_store %arg5[%c3, %c0_55, %c0_56], %205 {strides = array<i32>} : memref<8x1x128xf32, #tpu.memory_space<vmem>>, vector<1x1x128xf32>,
    %c8_i32_57 = arith.constant 8 : i32
    %206 = arith.muli %arg0, %c8_i32_57 : i32
    %c3_i32_58 = arith.constant 3 : i32
    %207 = arith.addi %206, %c3_i32_58 : i32
    %c12_i32_59 = arith.constant 12 : i32
    %208 = arith.cmpi slt, %207, %c12_i32_59 : i32
    %209 = arith.select %208, %190, %160 : vector<1x32xf32>
    %210 = arith.select %208, %188, %161 : vector<1x32xf32>
    %c8_i32_60 = arith.constant 8 : i32
    %211 = arith.muli %arg0, %c8_i32_60 : i32
    %c4_i32 = arith.constant 4 : i32
    %212 = arith.addi %211, %c4_i32 : i32
    %213 = arith.index_cast %212 : i32 to index
    %214 = memref.load %arg1[%213] : memref<16xi32, #tpu.memory_space<smem>>
    %215 = arith.index_cast %214 : i32 to index
    %c0_61 = arith.constant 0 : index
    %216 = vector.load %arg2[%215, %c0_61] : memref<128x32xf32, #tpu.memory_space<vmem>>, vector<1x32xf32>
    %217 = tpu.concatenate %216, %209 in 1 : vector<1x32xf32>, vector<1x32xf32> -> vector<1x64xf32>
    %cst_62 = arith.constant dense<0.000000e+00> : vector<1x128xf32>
    %218 = tpu.matmul %217, %3, %cst_62 {dimension_numbers = #tpu.dot_dimension_numbers<[1], [0], [0], [1], [0, 0, 1, 1], [], []>} : vector<1x64xf32>, vector<64x128xf32>, vector<1x128xf32> -> vector<1x128xf32>
    %219 = arith.addf %218, %5 : vector<1x128xf32>
    %220 = arith.addf %219, %219 : vector<1x128xf32>
    %221 = arith.select %12, %220, %219 : vector<1x128xi1>, vector<1x128xf32>
    %222 = arith.negf %221 : vector<1x128xf32>
    %223 = math.exp %222 : vector<1x128xf32>
    %cst_63 = arith.constant 1.000000e+00 : f32
    %224 = vector.broadcast %cst_63 : f32 to vector<1x128xf32>
    %225 = arith.addf %224, %223 : vector<1x128xf32>
    %226 = arith.divf %224, %225 : vector<1x128xf32>
    %227 = arith.addf %226, %226 : vector<1x128xf32>
    %cst_64 = arith.constant 1.000000e+00 : f32
    %228 = vector.broadcast %cst_64 : f32 to vector<1x128xf32>
    %229 = arith.subf %227, %228 : vector<1x128xf32>
    %230 = arith.select %12, %229, %226 : vector<1x128xi1>, vector<1x128xf32>
    %231 = vector.extract_strided_slice %230 {offsets = [0, 0], sizes = [1, 32], strides = [1, 1]} : vector<1x128xf32> to vector<1x32xf32>
    %232 = vector.extract_strided_slice %230 {offsets = [0, 32], sizes = [1, 32], strides = [1, 1]} : vector<1x128xf32> to vector<1x32xf32>
    %233 = vector.extract_strided_slice %230 {offsets = [0, 64], sizes = [1, 32], strides = [1, 1]} : vector<1x128xf32> to vector<1x32xf32>
    %234 = vector.extract_strided_slice %230 {offsets = [0, 96], sizes = [1, 32], strides = [1, 1]} : vector<1x128xf32> to vector<1x32xf32>
    %235 = arith.mulf %232, %210 : vector<1x32xf32>
    %236 = arith.mulf %231, %233 : vector<1x32xf32>
    %237 = arith.addf %235, %236 : vector<1x32xf32>
    %238 = math.tanh %237 : vector<1x32xf32>
    %239 = arith.mulf %234, %238 : vector<1x32xf32>
    %cst_65 = arith.constant dense<0.000000e+00> : vector<1x128xf32>
    %240 = tpu.matmul %239, %4, %cst_65 {dimension_numbers = #tpu.dot_dimension_numbers<[1], [0], [0], [1], [0, 0, 1, 1], [], []>} : vector<1x32xf32>, vector<32x128xf32>, vector<1x128xf32> -> vector<1x128xf32>
    %241 = arith.addf %240, %6 : vector<1x128xf32>
    %cst_66 = arith.constant dense<0xFF800000> : vector<1xf32>
    %242 = vector.multi_reduction <maximumf>, %241, %cst_66 [1] : vector<1x128xf32> to vector<1xf32>
    %243 = vector.shape_cast %242 : vector<1xf32> to vector<1x1xf32>
    %244 = vector.broadcast %243 : vector<1x1xf32> to vector<1x128xf32>
    %245 = arith.subf %241, %244 : vector<1x128xf32>
    %246 = math.exp %245 : vector<1x128xf32>
    %cst_67 = arith.constant dense<0.000000e+00> : vector<1xf32>
    %247 = vector.multi_reduction <add>, %246, %cst_67 [1] : vector<1x128xf32> to vector<1xf32>
    %248 = vector.shape_cast %247 : vector<1xf32> to vector<1x1xf32>
    %249 = math.log %248 : vector<1x1xf32>
    %250 = vector.broadcast %249 : vector<1x1xf32> to vector<1x128xf32>
    %251 = arith.subf %245, %250 : vector<1x128xf32>
    %c4 = arith.constant 4 : index
    %c0_68 = arith.constant 0 : index
    %c0_69 = arith.constant 0 : index
    %252 = vector.load %arg5[%c4, %c0_68, %c0_69] : memref<8x1x128xf32, #tpu.memory_space<vmem>>, vector<1x1x128xf32>
    %253 = vector.shape_cast %252 : vector<1x1x128xf32> to vector<1x128xf32>
    %254 = vector.shape_cast %251 : vector<1x128xf32> to vector<1x1x128xf32>
    tpu.vector_store %arg5[%c4, %c0_68, %c0_69], %254 {strides = array<i32>} : memref<8x1x128xf32, #tpu.memory_space<vmem>>, vector<1x1x128xf32>,
    %c8_i32_70 = arith.constant 8 : i32
    %255 = arith.muli %arg0, %c8_i32_70 : i32
    %c4_i32_71 = arith.constant 4 : i32
    %256 = arith.addi %255, %c4_i32_71 : i32
    %c12_i32_72 = arith.constant 12 : i32
    %257 = arith.cmpi slt, %256, %c12_i32_72 : i32
    %258 = arith.select %257, %239, %209 : vector<1x32xf32>
    %259 = arith.select %257, %237, %210 : vector<1x32xf32>
    %c8_i32_73 = arith.constant 8 : i32
    %260 = arith.muli %arg0, %c8_i32_73 : i32
    %c5_i32 = arith.constant 5 : i32
    %261 = arith.addi %260, %c5_i32 : i32
    %262 = arith.index_cast %261 : i32 to index
    %263 = memref.load %arg1[%262] : memref<16xi32, #tpu.memory_space<smem>>
    %264 = arith.index_cast %263 : i32 to index
    %c0_74 = arith.constant 0 : index
    %265 = vector.load %arg2[%264, %c0_74] : memref<128x32xf32, #tpu.memory_space<vmem>>, vector<1x32xf32>
    %266 = tpu.concatenate %265, %258 in 1 : vector<1x32xf32>, vector<1x32xf32> -> vector<1x64xf32>
    %cst_75 = arith.constant dense<0.000000e+00> : vector<1x128xf32>
    %267 = tpu.matmul %266, %3, %cst_75 {dimension_numbers = #tpu.dot_dimension_numbers<[1], [0], [0], [1], [0, 0, 1, 1], [], []>} : vector<1x64xf32>, vector<64x128xf32>, vector<1x128xf32> -> vector<1x128xf32>
    %268 = arith.addf %267, %5 : vector<1x128xf32>
    %269 = arith.addf %268, %268 : vector<1x128xf32>
    %270 = arith.select %12, %269, %268 : vector<1x128xi1>, vector<1x128xf32>
    %271 = arith.negf %270 : vector<1x128xf32>
    %272 = math.exp %271 : vector<1x128xf32>
    %cst_76 = arith.constant 1.000000e+00 : f32
    %273 = vector.broadcast %cst_76 : f32 to vector<1x128xf32>
    %274 = arith.addf %273, %272 : vector<1x128xf32>
    %275 = arith.divf %273, %274 : vector<1x128xf32>
    %276 = arith.addf %275, %275 : vector<1x128xf32>
    %cst_77 = arith.constant 1.000000e+00 : f32
    %277 = vector.broadcast %cst_77 : f32 to vector<1x128xf32>
    %278 = arith.subf %276, %277 : vector<1x128xf32>
    %279 = arith.select %12, %278, %275 : vector<1x128xi1>, vector<1x128xf32>
    %280 = vector.extract_strided_slice %279 {offsets = [0, 0], sizes = [1, 32], strides = [1, 1]} : vector<1x128xf32> to vector<1x32xf32>
    %281 = vector.extract_strided_slice %279 {offsets = [0, 32], sizes = [1, 32], strides = [1, 1]} : vector<1x128xf32> to vector<1x32xf32>
    %282 = vector.extract_strided_slice %279 {offsets = [0, 64], sizes = [1, 32], strides = [1, 1]} : vector<1x128xf32> to vector<1x32xf32>
    %283 = vector.extract_strided_slice %279 {offsets = [0, 96], sizes = [1, 32], strides = [1, 1]} : vector<1x128xf32> to vector<1x32xf32>
    %284 = arith.mulf %281, %259 : vector<1x32xf32>
    %285 = arith.mulf %280, %282 : vector<1x32xf32>
    %286 = arith.addf %284, %285 : vector<1x32xf32>
    %287 = math.tanh %286 : vector<1x32xf32>
    %288 = arith.mulf %283, %287 : vector<1x32xf32>
    %cst_78 = arith.constant dense<0.000000e+00> : vector<1x128xf32>
    %289 = tpu.matmul %288, %4, %cst_78 {dimension_numbers = #tpu.dot_dimension_numbers<[1], [0], [0], [1], [0, 0, 1, 1], [], []>} : vector<1x32xf32>, vector<32x128xf32>, vector<1x128xf32> -> vector<1x128xf32>
    %290 = arith.addf %289, %6 : vector<1x128xf32>
    %cst_79 = arith.constant dense<0xFF800000> : vector<1xf32>
    %291 = vector.multi_reduction <maximumf>, %290, %cst_79 [1] : vector<1x128xf32> to vector<1xf32>
    %292 = vector.shape_cast %291 : vector<1xf32> to vector<1x1xf32>
    %293 = vector.broadcast %292 : vector<1x1xf32> to vector<1x128xf32>
    %294 = arith.subf %290, %293 : vector<1x128xf32>
    %295 = math.exp %294 : vector<1x128xf32>
    %cst_80 = arith.constant dense<0.000000e+00> : vector<1xf32>
    %296 = vector.multi_reduction <add>, %295, %cst_80 [1] : vector<1x128xf32> to vector<1xf32>
    %297 = vector.shape_cast %296 : vector<1xf32> to vector<1x1xf32>
    %298 = math.log %297 : vector<1x1xf32>
    %299 = vector.broadcast %298 : vector<1x1xf32> to vector<1x128xf32>
    %300 = arith.subf %294, %299 : vector<1x128xf32>
    %c5 = arith.constant 5 : index
    %c0_81 = arith.constant 0 : index
    %c0_82 = arith.constant 0 : index
    %301 = vector.load %arg5[%c5, %c0_81, %c0_82] : memref<8x1x128xf32, #tpu.memory_space<vmem>>, vector<1x1x128xf32>
    %302 = vector.shape_cast %301 : vector<1x1x128xf32> to vector<1x128xf32>
    %303 = vector.shape_cast %300 : vector<1x128xf32> to vector<1x1x128xf32>
    tpu.vector_store %arg5[%c5, %c0_81, %c0_82], %303 {strides = array<i32>} : memref<8x1x128xf32, #tpu.memory_space<vmem>>, vector<1x1x128xf32>,
    %c8_i32_83 = arith.constant 8 : i32
    %304 = arith.muli %arg0, %c8_i32_83 : i32
    %c5_i32_84 = arith.constant 5 : i32
    %305 = arith.addi %304, %c5_i32_84 : i32
    %c12_i32_85 = arith.constant 12 : i32
    %306 = arith.cmpi slt, %305, %c12_i32_85 : i32
    %307 = arith.select %306, %288, %258 : vector<1x32xf32>
    %308 = arith.select %306, %286, %259 : vector<1x32xf32>
    %c8_i32_86 = arith.constant 8 : i32
    %309 = arith.muli %arg0, %c8_i32_86 : i32
    %c6_i32 = arith.constant 6 : i32
    %310 = arith.addi %309, %c6_i32 : i32
    %311 = arith.index_cast %310 : i32 to index
    %312 = memref.load %arg1[%311] : memref<16xi32, #tpu.memory_space<smem>>
    %313 = arith.index_cast %312 : i32 to index
    %c0_87 = arith.constant 0 : index
    %314 = vector.load %arg2[%313, %c0_87] : memref<128x32xf32, #tpu.memory_space<vmem>>, vector<1x32xf32>
    %315 = tpu.concatenate %314, %307 in 1 : vector<1x32xf32>, vector<1x32xf32> -> vector<1x64xf32>
    %cst_88 = arith.constant dense<0.000000e+00> : vector<1x128xf32>
    %316 = tpu.matmul %315, %3, %cst_88 {dimension_numbers = #tpu.dot_dimension_numbers<[1], [0], [0], [1], [0, 0, 1, 1], [], []>} : vector<1x64xf32>, vector<64x128xf32>, vector<1x128xf32> -> vector<1x128xf32>
    %317 = arith.addf %316, %5 : vector<1x128xf32>
    %318 = arith.addf %317, %317 : vector<1x128xf32>
    %319 = arith.select %12, %318, %317 : vector<1x128xi1>, vector<1x128xf32>
    %320 = arith.negf %319 : vector<1x128xf32>
    %321 = math.exp %320 : vector<1x128xf32>
    %cst_89 = arith.constant 1.000000e+00 : f32
    %322 = vector.broadcast %cst_89 : f32 to vector<1x128xf32>
    %323 = arith.addf %322, %321 : vector<1x128xf32>
    %324 = arith.divf %322, %323 : vector<1x128xf32>
    %325 = arith.addf %324, %324 : vector<1x128xf32>
    %cst_90 = arith.constant 1.000000e+00 : f32
    %326 = vector.broadcast %cst_90 : f32 to vector<1x128xf32>
    %327 = arith.subf %325, %326 : vector<1x128xf32>
    %328 = arith.select %12, %327, %324 : vector<1x128xi1>, vector<1x128xf32>
    %329 = vector.extract_strided_slice %328 {offsets = [0, 0], sizes = [1, 32], strides = [1, 1]} : vector<1x128xf32> to vector<1x32xf32>
    %330 = vector.extract_strided_slice %328 {offsets = [0, 32], sizes = [1, 32], strides = [1, 1]} : vector<1x128xf32> to vector<1x32xf32>
    %331 = vector.extract_strided_slice %328 {offsets = [0, 64], sizes = [1, 32], strides = [1, 1]} : vector<1x128xf32> to vector<1x32xf32>
    %332 = vector.extract_strided_slice %328 {offsets = [0, 96], sizes = [1, 32], strides = [1, 1]} : vector<1x128xf32> to vector<1x32xf32>
    %333 = arith.mulf %330, %308 : vector<1x32xf32>
    %334 = arith.mulf %329, %331 : vector<1x32xf32>
    %335 = arith.addf %333, %334 : vector<1x32xf32>
    %336 = math.tanh %335 : vector<1x32xf32>
    %337 = arith.mulf %332, %336 : vector<1x32xf32>
    %cst_91 = arith.constant dense<0.000000e+00> : vector<1x128xf32>
    %338 = tpu.matmul %337, %4, %cst_91 {dimension_numbers = #tpu.dot_dimension_numbers<[1], [0], [0], [1], [0, 0, 1, 1], [], []>} : vector<1x32xf32>, vector<32x128xf32>, vector<1x128xf32> -> vector<1x128xf32>
    %339 = arith.addf %338, %6 : vector<1x128xf32>
    %cst_92 = arith.constant dense<0xFF800000> : vector<1xf32>
    %340 = vector.multi_reduction <maximumf>, %339, %cst_92 [1] : vector<1x128xf32> to vector<1xf32>
    %341 = vector.shape_cast %340 : vector<1xf32> to vector<1x1xf32>
    %342 = vector.broadcast %341 : vector<1x1xf32> to vector<1x128xf32>
    %343 = arith.subf %339, %342 : vector<1x128xf32>
    %344 = math.exp %343 : vector<1x128xf32>
    %cst_93 = arith.constant dense<0.000000e+00> : vector<1xf32>
    %345 = vector.multi_reduction <add>, %344, %cst_93 [1] : vector<1x128xf32> to vector<1xf32>
    %346 = vector.shape_cast %345 : vector<1xf32> to vector<1x1xf32>
    %347 = math.log %346 : vector<1x1xf32>
    %348 = vector.broadcast %347 : vector<1x1xf32> to vector<1x128xf32>
    %349 = arith.subf %343, %348 : vector<1x128xf32>
    %c6 = arith.constant 6 : index
    %c0_94 = arith.constant 0 : index
    %c0_95 = arith.constant 0 : index
    %350 = vector.load %arg5[%c6, %c0_94, %c0_95] : memref<8x1x128xf32, #tpu.memory_space<vmem>>, vector<1x1x128xf32>
    %351 = vector.shape_cast %350 : vector<1x1x128xf32> to vector<1x128xf32>
    %352 = vector.shape_cast %349 : vector<1x128xf32> to vector<1x1x128xf32>
    tpu.vector_store %arg5[%c6, %c0_94, %c0_95], %352 {strides = array<i32>} : memref<8x1x128xf32, #tpu.memory_space<vmem>>, vector<1x1x128xf32>,
    %c8_i32_96 = arith.constant 8 : i32
    %353 = arith.muli %arg0, %c8_i32_96 : i32
    %c6_i32_97 = arith.constant 6 : i32
    %354 = arith.addi %353, %c6_i32_97 : i32
    %c12_i32_98 = arith.constant 12 : i32
    %355 = arith.cmpi slt, %354, %c12_i32_98 : i32
    %356 = arith.select %355, %337, %307 : vector<1x32xf32>
    %357 = arith.select %355, %335, %308 : vector<1x32xf32>
    %c8_i32_99 = arith.constant 8 : i32
    %358 = arith.muli %arg0, %c8_i32_99 : i32
    %c7_i32 = arith.constant 7 : i32
    %359 = arith.addi %358, %c7_i32 : i32
    %360 = arith.index_cast %359 : i32 to index
    %361 = memref.load %arg1[%360] : memref<16xi32, #tpu.memory_space<smem>>
    %362 = arith.index_cast %361 : i32 to index
    %c0_100 = arith.constant 0 : index
    %363 = vector.load %arg2[%362, %c0_100] : memref<128x32xf32, #tpu.memory_space<vmem>>, vector<1x32xf32>
    %364 = tpu.concatenate %363, %356 in 1 : vector<1x32xf32>, vector<1x32xf32> -> vector<1x64xf32>
    %cst_101 = arith.constant dense<0.000000e+00> : vector<1x128xf32>
    %365 = tpu.matmul %364, %3, %cst_101 {dimension_numbers = #tpu.dot_dimension_numbers<[1], [0], [0], [1], [0, 0, 1, 1], [], []>} : vector<1x64xf32>, vector<64x128xf32>, vector<1x128xf32> -> vector<1x128xf32>
    %366 = arith.addf %365, %5 : vector<1x128xf32>
    %367 = arith.addf %366, %366 : vector<1x128xf32>
    %368 = arith.select %12, %367, %366 : vector<1x128xi1>, vector<1x128xf32>
    %369 = arith.negf %368 : vector<1x128xf32>
    %370 = math.exp %369 : vector<1x128xf32>
    %cst_102 = arith.constant 1.000000e+00 : f32
    %371 = vector.broadcast %cst_102 : f32 to vector<1x128xf32>
    %372 = arith.addf %371, %370 : vector<1x128xf32>
    %373 = arith.divf %371, %372 : vector<1x128xf32>
    %374 = arith.addf %373, %373 : vector<1x128xf32>
    %cst_103 = arith.constant 1.000000e+00 : f32
    %375 = vector.broadcast %cst_103 : f32 to vector<1x128xf32>
    %376 = arith.subf %374, %375 : vector<1x128xf32>
    %377 = arith.select %12, %376, %373 : vector<1x128xi1>, vector<1x128xf32>
    %378 = vector.extract_strided_slice %377 {offsets = [0, 0], sizes = [1, 32], strides = [1, 1]} : vector<1x128xf32> to vector<1x32xf32>
    %379 = vector.extract_strided_slice %377 {offsets = [0, 32], sizes = [1, 32], strides = [1, 1]} : vector<1x128xf32> to vector<1x32xf32>
    %380 = vector.extract_strided_slice %377 {offsets = [0, 64], sizes = [1, 32], strides = [1, 1]} : vector<1x128xf32> to vector<1x32xf32>
    %381 = vector.extract_strided_slice %377 {offsets = [0, 96], sizes = [1, 32], strides = [1, 1]} : vector<1x128xf32> to vector<1x32xf32>
    %382 = arith.mulf %379, %357 : vector<1x32xf32>
    %383 = arith.mulf %378, %380 : vector<1x32xf32>
    %384 = arith.addf %382, %383 : vector<1x32xf32>
    %385 = math.tanh %384 : vector<1x32xf32>
    %386 = arith.mulf %381, %385 : vector<1x32xf32>
    %cst_104 = arith.constant dense<0.000000e+00> : vector<1x128xf32>
    %387 = tpu.matmul %386, %4, %cst_104 {dimension_numbers = #tpu.dot_dimension_numbers<[1], [0], [0], [1], [0, 0, 1, 1], [], []>} : vector<1x32xf32>, vector<32x128xf32>, vector<1x128xf32> -> vector<1x128xf32>
    %388 = arith.addf %387, %6 : vector<1x128xf32>
    %cst_105 = arith.constant dense<0xFF800000> : vector<1xf32>
    %389 = vector.multi_reduction <maximumf>, %388, %cst_105 [1] : vector<1x128xf32> to vector<1xf32>
    %390 = vector.shape_cast %389 : vector<1xf32> to vector<1x1xf32>
    %391 = vector.broadcast %390 : vector<1x1xf32> to vector<1x128xf32>
    %392 = arith.subf %388, %391 : vector<1x128xf32>
    %393 = math.exp %392 : vector<1x128xf32>
    %cst_106 = arith.constant dense<0.000000e+00> : vector<1xf32>
    %394 = vector.multi_reduction <add>, %393, %cst_106 [1] : vector<1x128xf32> to vector<1xf32>
    %395 = vector.shape_cast %394 : vector<1xf32> to vector<1x1xf32>
    %396 = math.log %395 : vector<1x1xf32>
    %397 = vector.broadcast %396 : vector<1x1xf32> to vector<1x128xf32>
    %398 = arith.subf %392, %397 : vector<1x128xf32>
    %c7 = arith.constant 7 : index
    %c0_107 = arith.constant 0 : index
    %c0_108 = arith.constant 0 : index
    %399 = vector.load %arg5[%c7, %c0_107, %c0_108] : memref<8x1x128xf32, #tpu.memory_space<vmem>>, vector<1x1x128xf32>
    %400 = vector.shape_cast %399 : vector<1x1x128xf32> to vector<1x128xf32>
    %401 = vector.shape_cast %398 : vector<1x128xf32> to vector<1x1x128xf32>
    tpu.vector_store %arg5[%c7, %c0_107, %c0_108], %401 {strides = array<i32>} : memref<8x1x128xf32, #tpu.memory_space<vmem>>, vector<1x1x128xf32>,
    %c8_i32_109 = arith.constant 8 : i32
    %402 = arith.muli %arg0, %c8_i32_109 : i32
    %c7_i32_110 = arith.constant 7 : i32
    %403 = arith.addi %402, %c7_i32_110 : i32
    %c12_i32_111 = arith.constant 12 : i32
    %404 = arith.cmpi slt, %403, %c12_i32_111 : i32
    %405 = arith.select %404, %386, %356 : vector<1x32xf32>
    %406 = arith.select %404, %384, %357 : vector<1x32xf32>
    %c0_112 = arith.constant 0 : index
    %c0_113 = arith.constant 0 : index
    %407 = vector.load %arg7[%c0_112, %c0_113] : memref<2x32xf32, #tpu.memory_space<vmem>>, vector<1x32xf32>
    tpu.vector_store %arg7[%c0_112, %c0_113], %405 {strides = array<i32>} : memref<2x32xf32, #tpu.memory_space<vmem>>, vector<1x32xf32>,
    %c1_114 = arith.constant 1 : index
    %c0_115 = arith.constant 0 : index
    %408 = vector.load %arg7[%c1_114, %c0_115] : memref<2x32xf32, #tpu.memory_space<vmem>>, vector<1x32xf32>
    tpu.vector_store %arg7[%c1_114, %c0_115], %406 {strides = array<i32>} : memref<2x32xf32, #tpu.memory_space<vmem>>, vector<1x32xf32>,
    %c1_i32_116 = arith.constant 1 : i32
    %409 = arith.cmpi eq, %arg0, %c1_i32_116 : i32
    %410 = arith.extui %409 : i1 to i32
    %c0_i32_117 = arith.constant 0 : i32
    %411 = arith.cmpi ne, %410, %c0_i32_117 : i32
    scf.if %411 {
      %c0_118 = arith.constant 0 : index
      %c0_119 = arith.constant 0 : index
      %412 = vector.load %arg7[%c0_118, %c0_119] : memref<2x32xf32, #tpu.memory_space<vmem>>, vector<2x32xf32>
      %c0_120 = arith.constant 0 : index
      %c0_121 = arith.constant 0 : index
      %413 = vector.load %arg6[%c0_120, %c0_121] : memref<2x32xf32, #tpu.memory_space<vmem>>, vector<2x32xf32>
      tpu.vector_store %arg6[%c0_120, %c0_121], %412 {strides = array<i32>} : memref<2x32xf32, #tpu.memory_space<vmem>>, vector<2x32xf32>,
    } else {
    }
    return
  }
  func.func @transform_0(%arg0: i32, %arg1: memref<16xi32, #tpu.memory_space<smem>>) -> (i32, i32) {
    %c0_i32 = arith.constant 0 : i32
    %c0_i32_0 = arith.constant 0 : i32
    %c0_i32_1 = arith.constant 0 : i32
    return %c0_i32, %c0_i32_0 : i32, i32
  }
  func.func @transform_1(%arg0: i32, %arg1: memref<16xi32, #tpu.memory_space<smem>>) -> (i32, i32) {
    %c0_i32 = arith.constant 0 : i32
    %c0_i32_0 = arith.constant 0 : i32
    %c0_i32_1 = arith.constant 0 : i32
    return %c0_i32, %c0_i32_0 : i32, i32
  }
  func.func @transform_2(%arg0: i32, %arg1: memref<16xi32, #tpu.memory_space<smem>>) -> (i32, i32) {
    %c0_i32 = arith.constant 0 : i32
    %c0_i32_0 = arith.constant 0 : i32
    %c0_i32_1 = arith.constant 0 : i32
    return %c0_i32, %c0_i32_0 : i32, i32
  }
  func.func @transform_3(%arg0: i32, %arg1: memref<16xi32, #tpu.memory_space<smem>>) -> (i32, i32, i32) {
    %c0_i32 = arith.constant 0 : i32
    %c0_i32_0 = arith.constant 0 : i32
    %c0_i32_1 = arith.constant 0 : i32
    return %arg0, %c0_i32, %c0_i32_0 : i32, i32, i32
  }
  func.func @transform_4(%arg0: i32, %arg1: memref<16xi32, #tpu.memory_space<smem>>) -> (i32, i32) {
    %c0_i32 = arith.constant 0 : i32
    %c0_i32_0 = arith.constant 0 : i32
    %c0_i32_1 = arith.constant 0 : i32
    return %c0_i32, %c0_i32_0 : i32, i32
  }
}

</mosaic_0001>

<bundles_post_ra>
// kernel: decoder_rnn_decode.1
= control target key start
LH: loop header
LB: loop body
LE: loop exit
PB: predicated region body
PF: predicated region fallthrough
CT: control target
= control target key end

     0   :  { %s3133_s0 = inlined_call_operand.vmem [shape: s32[16], index: 0, kind: input, shape index: {}]   ;;  %s3134_s1 = inlined_call_operand.vmem [shape: f32[128,32], index: 1, kind: input, shape index: {}]   ;;  %s3135_s2 = inlined_call_operand.vmem [shape: f32[98,128], index: 2, kind: input, shape index: {}]   ;;  %s3136_s3 = inlined_call_operand.vmem [shape: f32[2,32], index: 3, kind: input, shape index: {}]   ;;  %s3137_s4 = inlined_call_operand.vmem [shape: f32[16,1,128], index: 4, kind: output, shape index: {0}]   ;;  %s3138_s5 = inlined_call_operand.vmem [shape: f32[2,32], index: 5, kind: output, shape index: {1}]  }
   0x1   :  { %s11_s20 = sshll.u32 %s3133_s0, 4  ;;  %s12_s20 = int_to_ptr.vmem [resolvable:$true] %s11_s20 }
   0x2   :  { %s2569_s21 = scalar_lea.vmem %s12_s20, 16  ;;  %p2574_p1 = scmp.lt.s32.totalorder %s12_s20, %s12_s20 }
   0x3   :  { %p2570_p0 = scmp.ne.s32.totalorder %s12_s20, %s2569_s21  ;;  %p2575_p2 = scmp.lt.s32.totalorder %s2569_s21, %s2569_s21 }
   0x5   :  { %p2576_p3 = por %p2575_p2, %p2574_p1 }
   0x7   :  { %p2577_p4 = pnand %p2576_p3, %p2570_p0 }
   0x9   :  { %2580 = shalt.err (!%p2577_p4)  }
   0xa   :  { %s2591_s22 = smov [#allocation4]  }
   0xb   :  { %14 = dma.vmem_to_smem %s12_s20, 16, %s2591_s22, [#allocation3] }
   0xc   :  { %2585 = dma.done.wait [#allocation3], 16 }
   0xd   :  { %2586 = vsyncadd [#allocation3], 4294967280 }
   0xe   :  { %16 = sfence }
   0xf   :  { %s2631_s23 = smov 0  }
  0x10 LB: > { %s2637_s0 = sadd.s32 4294967295, %s2589_s23   ;;  %p1932_p5 = scmp.ge.s32.totalorder %s2589_s23, 1  ;;  %s2589_s23 = sphi %s2631_s23, %s22_s23  }
  0x11   : > { %p157_p6 = scmp.lt.s32.totalorder %s2589_s23, 3 }
  0x13   : > { %p158_p7 = pnand %p1932_p5, %p157_p6 }
  0x14   : > { %s2642_s24 = sshll.u32 (!%p158_p7), %s2637_s0, 3  ;;  %p1934_p9 = scmp.ne.s32.totalorder (!%p158_p7), %s2637_s0, 0 }
  0x15   : > { %161 = sbr.rel (%p158_p7) target bundleno = 6597 (0x19c5), region = 32  ;;  %p178_p8 = scmp.lt.s32.totalorder (!%p158_p7), %s2642_s24, 15 }
  0x1c   : > { %s179_s25 = scalar_select %p178_p8, %s2642_s24, 15 }
  0x1d   : > { %185 = sbr.rel (%p1934_p9) target bundleno = 36 (0x24), region = 36  ;;  %v186_v0 = vld [vmem:[%s3136_s3] sm:$0x3] (!%p1934_p9)  ;;  %vm187_vm0 = vcmask (!%p1934_p9), 254976  }
  0x1e   : > { %s2649_s28 = scalar_lea.vmem %s3137_s4, %s179_s25  ;;  %188 = vst.msk [vmem:[#allocation2] sm:$0x3] (!%p1934_p9), %vm187_vm0, %v186_v0 }
  0x24 PF: > { %v189_v2 = vld [vmem:[%s3135_s2] sm:$0xff]  ;;  %v190_v3 = vld [vmem:[%s3135_s2 + $0x8] sm:$0xff]  ;;  %s2592_s10 = smov 32   ;;  %v2593_v4 = vmov 0.0|0.0   ;;  %v191_v6 = vld [vmem:[%s3135_s2 + $0x10] sm:$0xff]  ;;  %vm2594_vm1 = vmmov 0   ;;  %v203_v20 = vlaneseq }
  0x25   : > { %v2655_v1 = vld [vmem:[#allocation2] sm:$0x1]  ;;  %2330 = vmatprep.subr.bf16.mxu0 %v2593_v4  ;;  %v2666_v5 = vpack.c.bf16 %v190_v3, %v189_v2  ;;  %v192_v7 = vld [vmem:[%s3135_s2 + $0x18] sm:$0xff]  ;;  %2342 = vmatprep.subr.bf16.mxu1 %v2593_v4  ;;  %v2595_v9 = vmov 0.0   ;;  %v209_v10 = vld [vmem:[#allocation2 + $0x1] sm:$0x1] }
  0x26   : > { %215 = vrot.lane.b32.xlu0 %v2655_v1, %s2592_s10  ;;  %v2676_v8 = vpack.c.bf16 %v192_v7, %v191_v6  ;;  %2106 = vmatprep.mubr.msk.f32.mxu0 %vm2594_vm1, %v2595_v9  ;;  %v193_v11 = vld [vmem:[%s3135_s2 + $0x20] sm:$0xff]  ;;  %v194_v12 = vld [vmem:[%s3135_s2 + $0x28] sm:$0xff]  ;;  %v195_v14 = vld [vmem:[%s3135_s2 + $0x30] sm:$0xff]  ;;  %s211_s25 = sld [smem:[#allocation4 + %s2642_s24]]  ;;  %vm218_vm2 = vcmask 261120   ;;  %vm220_vm3 = vcmask 523264  }
  0x27   : > { %2332 = vmatpush3.bf16.msra.mxu0 %v2666_v5  ;;  %306 = vrot.lane.b32.xlu1 %v209_v10, %s2592_s10  ;;  %v2691_v13 = vpack.c.bf16 %v194_v12, %v193_v11  ;;  %v196_v15 = vld [vmem:[%s3135_s2 + $0x38] sm:$0xff]  ;;  %v204_v21 = vand.u32 127, %v203_v20  ;;  %v2717_v22 = vld [vmem:[%s3135_s2 + $0x60] sm:$0x1]  ;;  %s2596_s7 = smov 64   ;;  %s2597_s8 = smov 96  }
  0x28   : > { %2333 = vmatprep.subr.bf16.mxu0 %v2593_v4  ;;  %2117 = vmatprep.mubr.msk.f32.mxu1 %vm2594_vm1, %v2595_v9  ;;  %v2701_v16 = vpack.c.bf16 %v196_v15, %v195_v14  ;;  %v197_v42 = vld [vmem:[%s3135_s2 + $0x40] sm:$0xff]  ;;  %v198_v43 = vld [vmem:[%s3135_s2 + $0x48] sm:$0xff]  ;;  %v199_v44 = vld [vmem:[%s3135_s2 + $0x50] sm:$0xff]  ;;  %p415_p10 = scmp.lt.s32.totalorder %s2642_s24, 12  ;;  %s424_s19 = sadd.s32 1, %s2642_s24  ;;  %vm401_vm14 = vcmask 1040384  }
  0x29   : > { %vm205_vm4 = vcmp.ge.s32.totalorder %v204_v21, 64  ;;  %vm206_vm5 = vcmp.lt.s32.totalorder %v204_v21, 96  ;;  %v2747_v45 = vpack.c.bf16 %v198_v43, %v197_v42  ;;  %v200_v46 = vld [vmem:[%s3135_s2 + $0x58] sm:$0xff]  ;;  %s425_s20 = sld [smem:[#allocation4 + %s424_s19]]  ;;  %p623_p11 = scmp.lt.s32.totalorder %s424_s19, 12  ;;  %vm1863_vm0 = vcmask 253952  }
  0x2a   : > { %vm2720_vm6 = vmand %vm205_vm4, %vm206_vm5  ;;  %v2753_v47 = vpack.c.bf16 %v200_v46, %v199_v44  ;;  %s416_s18 = scalar_select %p415_p10, 1, 0  ;;  %v3059_v26 = vld [vmem:[%s3135_s2 + $0x61] sm:$0x1] }
  0x2b   : > { %2335 = vmatpush3.bf16.msra.mxu0 %v2676_v8  ;;  %2344 = vmatpush3.bf16.msra.mxu1 %v2747_v45  ;;  %s624_s26 = scalar_select %p623_p11, 1, 0 }
  0x2c   : > { %2336 = vmatprep.subr.bf16.mxu0 %v2593_v4  ;;  %s212_s29 = scalar_lea.vmem %s3134_s1, %s211_s25  ;;  %2345 = vmatprep.subr.bf16.mxu1 %v2593_v4  ;;  %v417_v49 = vstv %s416_s18  ;;  %s629_s27 = sadd.s32 2, %s2642_s24 }
  0x2d   : > { %v213_v17 = vld [vmem:[%s212_s29] sm:$0x1]  ;;  %vm2764_vm7 = vcmp.eq.s32.totalorder %v417_v49, 1  ;;  %s630_s29 = sld [smem:[#allocation4 + %s629_s27]]  ;;  %p828_p12 = scmp.lt.s32.totalorder %s629_s27, 12 }
  0x2e   : > { %s834_s12 = sadd.s32 3, %s2642_s24  ;;  %s1039_s18 = sadd.s32 4, %s2642_s24 }
  0x2f   : > { %2338 = vmatpush3.bf16.msra.mxu0 %v2691_v13  ;;  %2347 = vmatpush3.bf16.msra.mxu1 %v2753_v47  ;;  %s426_s25 = scalar_lea.vmem %s3134_s1, %s425_s20  ;;  %s835_s13 = sld [smem:[#allocation4 + %s834_s12]] }
  0x30   : > { %2339 = vmatprep.subr.bf16.mxu0 %v2593_v4  ;;  %2348 = vmatprep.subr.bf16.mxu1 %v2593_v4  ;;  %v427_v56 = vld [vmem:[%s426_s25] sm:$0x1]  ;;  %s829_s11 = scalar_select %p828_p12, 1, 0 }
  0x31   : > { %p1033_p13 = scmp.lt.s32.totalorder %s834_s12, 12  ;;  %s1040_s19 = sld [smem:[#allocation4 + %s1039_s18]] }
  0x32   : > { %p1238_p0 = scmp.lt.s32.totalorder %s1039_s18, 12  ;;  %p1975_p4 = scmp.ne.s32.totalorder %s2637_s0, 1 }
  0x33   : > { %2341 = vmatpush3.bf16.msra.mxu0 %v2701_v16  ;;  %s631_s9 = scalar_lea.vmem %s3134_s1, %s630_s29 }
  0x34   : > { %2360 = vmatprep.subr.bf16.mxu0 %v2593_v4  ;;  %s1034_s17 = scalar_select %p1033_p13, 1, 0 }
  0x35   : > { %s836_s16 = scalar_lea.vmem %s3134_s1, %s835_s13 }
  0x36   : > { %s1239_s25 = scalar_select %p1238_p0, 1, 0 }
  0x37   : > { %s1041_s22 = scalar_lea.vmem %s3134_s1, %s1040_s19 }
  0x98   : > { %v216_v18 = vpop.permute.xlu0 %215 }
  0x99   : > { %v219_v19 = vsel %vm218_vm2, %v213_v17, %v216_v18  ;;  %v2732_v38 = vpop.permute.xlu1 %306 }
  0x9a   : > { %2107 = vmatmul.mubr.msk.f32.vlgmr.msra.gmra.mrb[0].mxu0 %vm220_vm3, %v219_v19 }
  0x9b   : > { %2147 = vmatprep.mubr.msk.f32.mxu0 %vm2594_vm1, %v2595_v9  ;;  %2362 = vmatpush3.bf16.msra.mxu0 %v2747_v45 }
  0x9c   : > { %2363 = vmatprep.subr.bf16.mxu0 %v2593_v4 }
  0x9f   : > { %2365 = vmatpush3.bf16.msra.mxu0 %v2753_v47 }
  0xa0   : > { %2366 = vmatprep.subr.bf16.mxu0 %v2593_v4 }
 0x16d   : > { %v290_v23 = vpop.f32.mrb[0].mxu0 }
 0x16e   : > { %v291_v24 = vadd.f32 %v290_v23, %v2717_v22  ;;  %v2108_v25 = vpop.f32.mrb[1].mxu0  ;;  %v625_v23 = vstv %s624_s26  ;;  %s1244_s26 = sadd.s32 5, %s2642_s24 }
 0x16f   : > { %vm626_vm8 = vcmp.eq.s32.totalorder %v625_v23, 1  ;;  %s1245_s27 = sld [smem:[#allocation4 + %s1244_s26]]  ;;  %p1443_p1 = scmp.lt.s32.totalorder %s1244_s26, 12 }
 0x170   : > { %v294_v27 = vadd.f32 %v291_v24, %v291_v24 }
 0x172   : > { %v295_v28 = vsel %vm2720_vm6, %v294_v27, %v291_v24 }
 0x173   : > { %v1937_v29 = vmul.f32 -1.442695, %v295_v28 }
 0x175   : > { %2489 = vpow2.f32 %v1937_v29  ;;  %v632_v29 = vld [vmem:[%s631_s9] sm:$0x1]  ;;  %s1246_s6 = scalar_lea.vmem %s3134_s1, %s1245_s27 }
 0x176   : > { %s1444_s9 = scalar_select %p1443_p1, 1, 0 }
 0x17f   : > { %v2490_v30 = vpop.eup %2489 }
 0x180   : > { %v299_v31 = vadd.f32 1.0, %v2490_v30 }
 0x182   : > { %2491 = vrcp.f32 %v299_v31 }
 0x18c   : > { %v2492_v32 = vpop.eup %2491 }
 0x18d   : > { %v302_v33 = vadd.f32 %v2492_v32, %v2492_v32 }
 0x18f   : > { %v1938_v34 = vadd.f32 -1.0, %v302_v33 }
 0x191   : > { %v304_v35 = vsel %vm2720_vm6, %v1938_v34, %v2492_v32 }
 0x192   : > { %311 = vrot.lane.b32.xlu0 %v304_v35, %s2596_s7  ;;  %v309_v39 = vmul.f32 %v2732_v38, %v304_v35 }
 0x204   : > { %v312_v36 = vpop.permute.xlu0 %311 }
 0x205   : > { %v314_v37 = vmul.f32 %v312_v36, %v304_v35 }
 0x207   : > { %316 = vrot.lane.b32.xlu1 %v314_v37, %s2592_s10 }
 0x20b   : > { %419 = vrot.lane.b32.xlu1 %v2655_v1, %s2597_s8 }
 0x279   : > { %v317_v40 = vpop.permute.xlu1 %316 }
 0x27a   : > { %v2735_v41 = vadd.f32 %v317_v40, %v309_v39 }
 0x27c   : > { %2493 = vtanh.f32 %v2735_v41  ;;  %v423_v17 = vsel %vm2764_vm7, %v2735_v41, %v2732_v38 }
 0x27d   : > { %v420_v51 = vpop.permute.xlu1 %419 }
 0x286   : > { %v2494_v48 = vpop.eup %2493 }
 0x287   : > { %322 = vrot.lane.b32.xlu0 %v2494_v48, %s2596_s7 }
 0x2f9   : > { %v323_v50 = vpop.permute.xlu0 %322 }
 0x2fa   : > { %v325_v52 = vmul.f32 %v323_v50, %v304_v35 }
 0x2fc   : > { %327 = vrot.lane.b32.xlu0 %v325_v52, %s2592_s10  ;;  %v422_v54 = vsel %vm2764_vm7, %v325_v52, %v420_v51 }
 0x2fd   : > { %429 = vrot.lane.b32.xlu1 %v422_v54, %s2596_s7 }
 0x36e   : > { %v328_v55 = vpop.permute.xlu0 %327 }
 0x36f   : > { %2118 = vmatmul.mubr.msk.f32.vlgmr.msra.gmra.mrb[0].mxu1 %vm218_vm2, %v328_v55  ;;  %v430_v57 = vpop.permute.xlu1 %429  ;;  %v830_v55 = vstv %s829_s11  ;;  %s1449_s11 = sadd.s32 6, %s2642_s24 }
 0x370   : > { %2350 = vmatpush3.bf16.msra.mxu1 %v2666_v5  ;;  %2136 = vmatprep.mubr.msk.f32.mxu1 %vm2594_vm1, %v2595_v9  ;;  %v432_v58 = vsel %vm218_vm2, %v427_v56, %v430_v57  ;;  %vm831_vm9 = vcmp.eq.s32.totalorder %v830_v55, 1  ;;  %s1450_s12 = sld [smem:[#allocation4 + %s1449_s11]]  ;;  %p1648_p2 = scmp.lt.s32.totalorder %s1449_s11, 12 }
 0x371   : > { %2351 = vmatprep.subr.bf16.mxu1 %v2593_v4 }
 0x374   : > { %2353 = vmatpush3.bf16.msra.mxu1 %v2676_v8 }
 0x375   : > { %2354 = vmatprep.subr.bf16.mxu1 %v2593_v4 }
 0x376   : > { %s1451_s15 = scalar_lea.vmem %s3134_s1, %s1450_s12 }
 0x378   : > { %2356 = vmatpush3.bf16.msra.mxu1 %v2691_v13 }
 0x379   : > { %2357 = vmatprep.subr.bf16.mxu1 %v2593_v4 }
 0x37c   : > { %2359 = vmatpush3.bf16.msra.mxu1 %v2701_v16 }
 0x37d   : > { %2378 = vmatprep.subr.bf16.mxu1 %v2593_v4 }
 0x37f   : > { %2137 = vmatmul.mubr.msk.f32.vlgmr.msra.gmra.mrb[2].mxu1 %vm220_vm3, %v432_v58 }
 0x380   : > { %2380 = vmatpush3.bf16.msra.mxu1 %v2747_v45  ;;  %2177 = vmatprep.mubr.msk.f32.mxu1 %vm2594_vm1, %v2595_v9 }
 0x381   : > { %2381 = vmatprep.subr.bf16.mxu1 %v2593_v4 }
 0x384   : > { %2383 = vmatpush3.bf16.msra.mxu1 %v2753_v47 }
 0x385   : > { %2384 = vmatprep.subr.bf16.mxu1 %v2593_v4 }
 0x442   : > { %v2797_v59 = vpop.f32.mrb[0].mxu1 }
 0x443   : > { %v2119_v60 = vpop.f32.mrb[1].mxu1 }
 0x452   : > { %v502_v61 = vpop.f32.mrb[2].mxu1 }
 0x453   : > { %v503_v62 = vadd.f32 %v502_v61, %v2717_v22  ;;  %v2138_v63 = vpop.f32.mrb[3].mxu1  ;;  %v837_v61 = vld [vmem:[%s836_s16] sm:$0x1]  ;;  %s1649_s16 = scalar_select %p1648_p2, 1, 0 }
 0x455   : > { %v506_v0 = vadd.f32 %v503_v62, %v503_v62 }
 0x457   : > { %v507_v1 = vsel %vm2720_vm6, %v506_v0, %v503_v62 }
 0x458   : > { %v1941_v2 = vmul.f32 -1.442695, %v507_v1 }
 0x45a   : > { %2495 = vpow2.f32 %v1941_v2 }
 0x464   : > { %v2496_v3 = vpop.eup %2495 }
 0x465   : > { %v511_v6 = vadd.f32 1.0, %v2496_v3 }
 0x467   : > { %2497 = vrcp.f32 %v511_v6 }
 0x471   : > { %v2498_v7 = vpop.eup %2497 }
 0x472   : > { %v514_v10 = vadd.f32 %v2498_v7, %v2498_v7 }
 0x474   : > { %v1942_v11 = vadd.f32 -1.0, %v514_v10 }
 0x476   : > { %v516_v12 = vsel %vm2720_vm6, %v1942_v11, %v2498_v7 }
 0x477   : > { %519 = vrot.lane.b32.xlu0 %v516_v12, %s2596_s7  ;;  %v517_v18 = vmul.f32 %v516_v12, %v423_v17 }
 0x4e9   : > { %v520_v14 = vpop.permute.xlu0 %519 }
 0x4ea   : > { %v522_v15 = vmul.f32 %v520_v14, %v516_v12 }
 0x4ec   : > { %524 = vrot.lane.b32.xlu1 %v522_v15, %s2592_s10 }
 0x55e   : > { %v525_v19 = vpop.permute.xlu1 %524 }
 0x55f   : > { %v527_v20 = vadd.f32 %v525_v19, %v517_v18 }
 0x561   : > { %2499 = vtanh.f32 %v527_v20  ;;  %v628_v50 = vsel %vm626_vm8, %v527_v20, %v423_v17 }
 0x56b   : > { %v2500_v21 = vpop.eup %2499 }
 0x56c   : > { %530 = vrot.lane.b32.xlu0 %v2500_v21, %s2596_s7 }
 0x5de   : > { %v531_v24 = vpop.permute.xlu0 %530 }
 0x5df   : > { %v533_v25 = vmul.f32 %v531_v24, %v516_v12 }
 0x5e1   : > { %535 = vrot.lane.b32.xlu1 %v533_v25, %s2592_s10  ;;  %v627_v27 = vsel %vm626_vm8, %v533_v25, %v422_v54 }
 0x5e2   : > { %634 = vrot.lane.b32.xlu0 %v627_v27, %s2596_s7 }
 0x653   : > { %v536_v28 = vpop.permute.xlu1 %535 }
 0x654   : > { %2148 = vmatmul.mubr.msk.f32.vlgmr.msra.gmra.mrb[2].mxu0 %vm218_vm2, %v536_v28  ;;  %v635_v30 = vpop.permute.xlu0 %634 }
 0x655   : > { %2368 = vmatpush3.bf16.msra.mxu0 %v2666_v5  ;;  %2166 = vmatprep.mubr.msk.f32.mxu0 %vm2594_vm1, %v2595_v9  ;;  %v637_v31 = vsel %vm218_vm2, %v632_v29, %v635_v30  ;;  %v1035_v29 = vstv %s1034_s17  ;;  %s1654_s17 = sadd.s32 7, %s2642_s24 }
 0x656   : > { %2369 = vmatprep.subr.bf16.mxu0 %v2593_v4  ;;  %vm1036_vm10 = vcmp.eq.s32.totalorder %v1035_v29, 1  ;;  %s1655_s18 = sld [smem:[#allocation4 + %s1654_s17]]  ;;  %p1853_p3 = scmp.lt.s32.totalorder %s1654_s17, 12 }
 0x659   : > { %2371 = vmatpush3.bf16.msra.mxu0 %v2676_v8 }
 0x65a   : > { %2372 = vmatprep.subr.bf16.mxu0 %v2593_v4 }
 0x65c   : > { %s1656_s21 = scalar_lea.vmem %s3134_s1, %s1655_s18 }
 0x65d   : > { %2374 = vmatpush3.bf16.msra.mxu0 %v2691_v13 }
 0x65e   : > { %2375 = vmatprep.subr.bf16.mxu0 %v2593_v4 }
 0x661   : > { %2377 = vmatpush3.bf16.msra.mxu0 %v2701_v16 }
 0x662   : > { %2396 = vmatprep.subr.bf16.mxu0 %v2593_v4 }
 0x664   : > { %2167 = vmatmul.mubr.msk.f32.vlgmr.msra.gmra.mrb[4].mxu0 %vm220_vm3, %v637_v31 }
 0x665   : > { %2398 = vmatpush3.bf16.msra.mxu0 %v2747_v45  ;;  %2207 = vmatprep.mubr.msk.f32.mxu0 %vm2594_vm1, %v2595_v9 }
 0x666   : > { %2399 = vmatprep.subr.bf16.mxu0 %v2593_v4 }
 0x669   : > { %2401 = vmatpush3.bf16.msra.mxu0 %v2753_v47 }
 0x66a   : > { %2402 = vmatprep.subr.bf16.mxu0 %v2593_v4 }
 0x727   : > { %v2841_v32 = vpop.f32.mrb[2].mxu0 }
 0x728   : > { %v2149_v33 = vpop.f32.mrb[3].mxu0 }
 0x737   : > { %v707_v34 = vpop.f32.mrb[4].mxu0 }
 0x738   : > { %v708_v35 = vadd.f32 %v707_v34, %v2717_v22  ;;  %v2168_v36 = vpop.f32.mrb[5].mxu0 }
 0x73a   : > { %v711_v37 = vadd.f32 %v708_v35, %v708_v35 }
 0x73c   : > { %v712_v38 = vsel %vm2720_vm6, %v711_v37, %v708_v35  ;;  %v1042_v35 = vld [vmem:[%s1041_s22] sm:$0x1] }
 0x73d   : > { %v1946_v39 = vmul.f32 -1.442695, %v712_v38 }
 0x73f   : > { %2501 = vpow2.f32 %v1946_v39 }
 0x749   : > { %v2502_v40 = vpop.eup %2501 }
 0x74a   : > { %v716_v41 = vadd.f32 1.0, %v2502_v40 }
 0x74c   : > { %2503 = vrcp.f32 %v716_v41 }
 0x756   : > { %v2504_v42 = vpop.eup %2503 }
 0x757   : > { %v719_v43 = vadd.f32 %v2504_v42, %v2504_v42 }
 0x759   : > { %v1947_v44 = vadd.f32 -1.0, %v719_v43 }
 0x75b   : > { %v721_v46 = vsel %vm2720_vm6, %v1947_v44, %v2504_v42 }
 0x75c   : > { %724 = vrot.lane.b32.xlu1 %v721_v46, %s2596_s7  ;;  %v722_v51 = vmul.f32 %v721_v46, %v628_v50 }
 0x7ce   : > { %v725_v48 = vpop.permute.xlu1 %724 }
 0x7cf   : > { %v727_v49 = vmul.f32 %v725_v48, %v721_v46 }
 0x7d1   : > { %729 = vrot.lane.b32.xlu0 %v727_v49, %s2592_s10 }
 0x843   : > { %v730_v52 = vpop.permute.xlu0 %729 }
 0x844   : > { %v732_v53 = vadd.f32 %v730_v52, %v722_v51 }
 0x846   : > { %2505 = vtanh.f32 %v732_v53  ;;  %v833_v23 = vsel %vm831_vm9, %v732_v53, %v628_v50 }
 0x850   : > { %v2506_v54 = vpop.eup %2505 }
 0x851   : > { %735 = vrot.lane.b32.xlu1 %v2506_v54, %s2596_s7 }
 0x8c3   : > { %v736_v56 = vpop.permute.xlu1 %735 }
 0x8c4   : > { %v738_v57 = vmul.f32 %v736_v56, %v721_v46 }
 0x8c6   : > { %740 = vrot.lane.b32.xlu0 %v738_v57, %s2592_s10  ;;  %v832_v58 = vsel %vm831_vm9, %v738_v57, %v627_v27 }
 0x8c7   : > { %839 = vrot.lane.b32.xlu1 %v832_v58, %s2596_s7 }
 0x938   : > { %v741_v60 = vpop.permute.xlu0 %740 }
 0x939   : > { %2178 = vmatmul.mubr.msk.f32.vlgmr.msra.gmra.mrb[4].mxu1 %vm218_vm2, %v741_v60  ;;  %v840_v62 = vpop.permute.xlu1 %839 }
 0x93a   : > { %2386 = vmatpush3.bf16.msra.mxu1 %v2666_v5  ;;  %2196 = vmatprep.mubr.msk.f32.mxu1 %vm2594_vm1, %v2595_v9  ;;  %v842_v63 = vsel %vm218_vm2, %v837_v61, %v840_v62  ;;  %v1240_v62 = vstv %s1239_s25 }
 0x93b   : > { %2387 = vmatprep.subr.bf16.mxu1 %v2593_v4  ;;  %vm1241_vm11 = vcmp.eq.s32.totalorder %v1240_v62, 1 }
 0x93e   : > { %2389 = vmatpush3.bf16.msra.mxu1 %v2676_v8 }
 0x93f   : > { %2390 = vmatprep.subr.bf16.mxu1 %v2593_v4 }
 0x942   : > { %2392 = vmatpush3.bf16.msra.mxu1 %v2691_v13 }
 0x943   : > { %2393 = vmatprep.subr.bf16.mxu1 %v2593_v4 }
 0x946   : > { %2395 = vmatpush3.bf16.msra.mxu1 %v2701_v16 }
 0x947   : > { %2414 = vmatprep.subr.bf16.mxu1 %v2593_v4 }
 0x949   : > { %2197 = vmatmul.mubr.msk.f32.vlgmr.msra.gmra.mrb[6].mxu1 %vm220_vm3, %v842_v63 }
 0x94a   : > { %2416 = vmatpush3.bf16.msra.mxu1 %v2747_v45  ;;  %2237 = vmatprep.mubr.msk.f32.mxu1 %vm2594_vm1, %v2595_v9 }
 0x94b   : > { %2417 = vmatprep.subr.bf16.mxu1 %v2593_v4 }
 0x94e   : > { %2419 = vmatpush3.bf16.msra.mxu1 %v2753_v47 }
 0x94f   : > { %2420 = vmatprep.subr.bf16.mxu1 %v2593_v4 }
 0xa0c   : > { %v2882_v0 = vpop.f32.mrb[4].mxu1 }
 0xa0d   : > { %v2179_v1 = vpop.f32.mrb[5].mxu1 }
 0xa1c   : > { %v912_v2 = vpop.f32.mrb[6].mxu1 }
 0xa1d   : > { %v913_v3 = vadd.f32 %v912_v2, %v2717_v22  ;;  %v2198_v6 = vpop.f32.mrb[7].mxu1 }
 0xa1e   : > { %v1247_v6 = vld [vmem:[%s1246_s6] sm:$0x1] }
 0xa1f   : > { %v916_v7 = vadd.f32 %v913_v3, %v913_v3 }
 0xa21   : > { %v917_v10 = vsel %vm2720_vm6, %v916_v7, %v913_v3 }
 0xa22   : > { %v1951_v11 = vmul.f32 -1.442695, %v917_v10 }
 0xa24   : > { %2507 = vpow2.f32 %v1951_v11 }
 0xa2e   : > { %v2508_v12 = vpop.eup %2507 }
 0xa2f   : > { %v921_v14 = vadd.f32 1.0, %v2508_v12 }
 0xa31   : > { %2509 = vrcp.f32 %v921_v14 }
 0xa3b   : > { %v2510_v15 = vpop.eup %2509 }
 0xa3c   : > { %v924_v17 = vadd.f32 %v2510_v15, %v2510_v15 }
 0xa3e   : > { %v1952_v18 = vadd.f32 -1.0, %v924_v17 }
 0xa40   : > { %v926_v19 = vsel %vm2720_vm6, %v1952_v18, %v2510_v15 }
 0xa41   : > { %929 = vrot.lane.b32.xlu0 %v926_v19, %s2596_s7  ;;  %v927_v24 = vmul.f32 %v926_v19, %v833_v23 }
 0xab3   : > { %v930_v20 = vpop.permute.xlu0 %929 }
 0xab4   : > { %v932_v21 = vmul.f32 %v930_v20, %v926_v19 }
 0xab6   : > { %934 = vrot.lane.b32.xlu1 %v932_v21, %s2592_s10 }
 0xb28   : > { %v935_v25 = vpop.permute.xlu1 %934 }
 0xb29   : > { %v937_v27 = vadd.f32 %v935_v25, %v927_v24 }
 0xb2b   : > { %2511 = vtanh.f32 %v937_v27  ;;  %v1038_v56 = vsel %vm1036_vm10, %v937_v27, %v833_v23 }
 0xb35   : > { %v2512_v28 = vpop.eup %2511 }
 0xb36   : > { %940 = vrot.lane.b32.xlu0 %v2512_v28, %s2596_s7 }
 0xba8   : > { %v941_v30 = vpop.permute.xlu0 %940 }
 0xba9   : > { %v943_v31 = vmul.f32 %v941_v30, %v926_v19 }
 0xbab   : > { %945 = vrot.lane.b32.xlu1 %v943_v31, %s2592_s10  ;;  %v1037_v33 = vsel %vm1036_vm10, %v943_v31, %v832_v58 }
 0xbac   : > { %1044 = vrot.lane.b32.xlu0 %v1037_v33, %s2596_s7 }
 0xc1d   : > { %v946_v34 = vpop.permute.xlu1 %945 }
 0xc1e   : > { %2208 = vmatmul.mubr.msk.f32.vlgmr.msra.gmra.mrb[6].mxu0 %vm218_vm2, %v946_v34  ;;  %v1045_v36 = vpop.permute.xlu0 %1044 }
 0xc1f   : > { %2404 = vmatpush3.bf16.msra.mxu0 %v2666_v5  ;;  %2226 = vmatprep.mubr.msk.f32.mxu0 %vm2594_vm1, %v2595_v9  ;;  %v1047_v37 = vsel %vm218_vm2, %v1042_v35, %v1045_v36 }
 0xc20   : > { %2405 = vmatprep.subr.bf16.mxu0 %v2593_v4 }
 0xc23   : > { %2407 = vmatpush3.bf16.msra.mxu0 %v2676_v8 }
 0xc24   : > { %2408 = vmatprep.subr.bf16.mxu0 %v2593_v4 }
 0xc27   : > { %2410 = vmatpush3.bf16.msra.mxu0 %v2691_v13 }
 0xc28   : > { %2411 = vmatprep.subr.bf16.mxu0 %v2593_v4 }
 0xc2b   : > { %2413 = vmatpush3.bf16.msra.mxu0 %v2701_v16 }
 0xc2c   : > { %2432 = vmatprep.subr.bf16.mxu0 %v2593_v4 }
 0xc2e   : > { %2227 = vmatmul.mubr.msk.f32.vlgmr.msra.gmra.mrb[8].mxu0 %vm220_vm3, %v1047_v37  ;;  %v1445_v37 = vstv %s1444_s9 }
 0xc2f   : > { %2434 = vmatpush3.bf16.msra.mxu0 %v2747_v45  ;;  %2267 = vmatprep.mubr.msk.f32.mxu0 %vm2594_vm1, %v2595_v9  ;;  %vm1446_vm12 = vcmp.eq.s32.totalorder %v1445_v37, 1  ;;  %v398_v37 = vadd.f32 %v2797_v59, %v3059_v26 }
 0xc30   : > { %2435 = vmatprep.subr.bf16.mxu0 %v2593_v4 }
 0xc33   : > { %2437 = vmatpush3.bf16.msra.mxu0 %v2753_v47 }
 0xc34   : > { %2438 = vmatprep.subr.bf16.mxu0 %v2593_v4 }
 0xcf1   : > { %v2923_v38 = vpop.f32.mrb[6].mxu0 }
 0xcf2   : > { %v2209_v39 = vpop.f32.mrb[7].mxu0 }
 0xd01   : > { %v1117_v40 = vpop.f32.mrb[8].mxu0 }
 0xd02   : > { %v1118_v41 = vadd.f32 %v1117_v40, %v2717_v22  ;;  %v2228_v42 = vpop.f32.mrb[9].mxu0 }
 0xd04   : > { %v1121_v43 = vadd.f32 %v1118_v41, %v1118_v41 }
 0xd06   : > { %v1122_v44 = vsel %vm2720_vm6, %v1121_v43, %v1118_v41  ;;  %v1452_v43 = vld [vmem:[%s1451_s15] sm:$0x1] }
 0xd07   : > { %v1956_v46 = vmul.f32 -1.442695, %v1122_v44 }
 0xd09   : > { %2513 = vpow2.f32 %v1956_v46 }
 0xd13   : > { %v2514_v48 = vpop.eup %2513 }
 0xd14   : > { %v1126_v49 = vadd.f32 1.0, %v2514_v48 }
 0xd16   : > { %2515 = vrcp.f32 %v1126_v49 }
 0xd20   : > { %v2516_v50 = vpop.eup %2515 }
 0xd21   : > { %v1129_v51 = vadd.f32 %v2516_v50, %v2516_v50 }
 0xd23   : > { %v1957_v52 = vadd.f32 -1.0, %v1129_v51 }
 0xd25   : > { %v1131_v53 = vsel %vm2720_vm6, %v1957_v52, %v2516_v50 }
 0xd26   : > { %1134 = vrot.lane.b32.xlu1 %v1131_v53, %s2596_s7  ;;  %v1132_v57 = vmul.f32 %v1131_v53, %v1038_v56 }
 0xd98   : > { %v1135_v54 = vpop.permute.xlu1 %1134 }
 0xd99   : > { %v1137_v55 = vmul.f32 %v1135_v54, %v1131_v53 }
 0xd9b   : > { %1139 = vrot.lane.b32.xlu0 %v1137_v55, %s2592_s10 }
 0xe0d   : > { %v1140_v58 = vpop.permute.xlu0 %1139 }
 0xe0e   : > { %v1142_v60 = vadd.f32 %v1140_v58, %v1132_v57 }
 0xe10   : > { %2517 = vtanh.f32 %v1142_v60  ;;  %v1243_v31 = vsel %vm1241_vm11, %v1142_v60, %v1038_v56 }
 0xe1a   : > { %v2518_v61 = vpop.eup %2517 }
 0xe1b   : > { %1145 = vrot.lane.b32.xlu1 %v2518_v61, %s2596_s7 }
 0xe8d   : > { %v1146_v63 = vpop.permute.xlu1 %1145 }
 0xe8e   : > { %v1148_v1 = vmul.f32 %v1146_v63, %v1131_v53 }
 0xe90   : > { %1150 = vrot.lane.b32.xlu0 %v1148_v1, %s2592_s10  ;;  %v1242_v2 = vsel %vm1241_vm11, %v1148_v1, %v1037_v33 }
 0xe91   : > { %1249 = vrot.lane.b32.xlu1 %v1242_v2, %s2596_s7 }
 0xf02   : > { %v1151_v3 = vpop.permute.xlu0 %1150 }
 0xf03   : > { %2238 = vmatmul.mubr.msk.f32.vlgmr.msra.gmra.mrb[8].mxu1 %vm218_vm2, %v1151_v3  ;;  %v1250_v7 = vpop.permute.xlu1 %1249 }
 0xf04   : > { %2422 = vmatpush3.bf16.msra.mxu1 %v2666_v5  ;;  %2256 = vmatprep.mubr.msk.f32.mxu1 %vm2594_vm1, %v2595_v9  ;;  %v1252_v10 = vsel %vm218_vm2, %v1247_v6, %v1250_v7  ;;  %v1650_v7 = vstv %s1649_s16 }
 0xf05   : > { %2423 = vmatprep.subr.bf16.mxu1 %v2593_v4  ;;  %vm1651_vm13 = vcmp.eq.s32.totalorder %v1650_v7, 1 }
 0xf08   : > { %2425 = vmatpush3.bf16.msra.mxu1 %v2676_v8 }
 0xf09   : > { %2426 = vmatprep.subr.bf16.mxu1 %v2593_v4 }
 0xf0c   : > { %2428 = vmatpush3.bf16.msra.mxu1 %v2691_v13 }
 0xf0d   : > { %2429 = vmatprep.subr.bf16.mxu1 %v2593_v4 }
 0xf10   : > { %2431 = vmatpush3.bf16.msra.mxu1 %v2701_v16 }
 0xf11   : > { %2450 = vmatprep.subr.bf16.mxu1 %v2593_v4 }
 0xf13   : > { %2257 = vmatmul.mubr.msk.f32.vlgmr.msra.gmra.mrb[10].mxu1 %vm220_vm3, %v1252_v10 }
 0xf14   : > { %2452 = vmatpush3.bf16.msra.mxu1 %v2747_v45  ;;  %2297 = vmatprep.mubr.msk.f32.mxu1 %vm2594_vm1, %v2595_v9 }
 0xf15   : > { %2453 = vmatprep.subr.bf16.mxu1 %v2593_v4 }
 0xf18   : > { %2455 = vmatpush3.bf16.msra.mxu1 %v2753_v47 }
 0xf19   : > { %2456 = vmatprep.subr.bf16.mxu1 %v2593_v4 }
 0xfd6   : > { %v2964_v11 = vpop.f32.mrb[8].mxu1 }
 0xfd7   : > { %v2239_v12 = vpop.f32.mrb[9].mxu1 }
 0xfe6   : > { %v1322_v14 = vpop.f32.mrb[10].mxu1 }
 0xfe7   : > { %v1323_v15 = vadd.f32 %v1322_v14, %v2717_v22  ;;  %v2258_v17 = vpop.f32.mrb[11].mxu1 }
 0xfe9   : > { %v1326_v18 = vadd.f32 %v1323_v15, %v1323_v15 }
 0xfeb   : > { %v1327_v19 = vsel %vm2720_vm6, %v1326_v18, %v1323_v15 }
 0xfec   : > { %v1961_v20 = vmul.f32 -1.442695, %v1327_v19 }
 0xfee   : > { %2519 = vpow2.f32 %v1961_v20 }
 0xff8   : > { %v2520_v21 = vpop.eup %2519 }
 0xff9   : > { %v1331_v23 = vadd.f32 1.0, %v2520_v21 }
 0xffb   : > { %2521 = vrcp.f32 %v1331_v23 }
0x1005   : > { %v2522_v24 = vpop.eup %2521 }
0x1006   : > { %v1334_v25 = vadd.f32 %v2522_v24, %v2522_v24 }
0x1008   : > { %v1962_v27 = vadd.f32 -1.0, %v1334_v25 }
0x100a   : > { %v1336_v28 = vsel %vm2720_vm6, %v1962_v27, %v2522_v24 }
0x100b   : > { %1339 = vrot.lane.b32.xlu0 %v1336_v28, %s2596_s7  ;;  %v1337_v33 = vmul.f32 %v1336_v28, %v1243_v31 }
0x107d   : > { %v1340_v29 = vpop.permute.xlu0 %1339 }
0x107e   : > { %v1342_v30 = vmul.f32 %v1340_v29, %v1336_v28 }
0x1080   : > { %1344 = vrot.lane.b32.xlu1 %v1342_v30, %s2592_s10 }
0x10f2   : > { %v1345_v34 = vpop.permute.xlu1 %1344 }
0x10f3   : > { %v1347_v35 = vadd.f32 %v1345_v34, %v1337_v33 }
0x10f5   : > { %2523 = vtanh.f32 %v1347_v35  ;;  %v1448_v63 = vsel %vm1446_vm12, %v1347_v35, %v1243_v31 }
0x10ff   : > { %v2524_v36 = vpop.eup %2523 }
0x1100   : > { %1350 = vrot.lane.b32.xlu0 %v2524_v36, %s2596_s7 }
0x1172   : > { %v1351_v39 = vpop.permute.xlu0 %1350 }
0x1173   : > { %v1353_v40 = vmul.f32 %v1351_v39, %v1336_v28  ;;  %v606_v39 = vadd.f32 %v2841_v32, %v3059_v26 }
0x1175   : > { %1355 = vrot.lane.b32.xlu1 %v1353_v40, %s2592_s10  ;;  %v1447_v41 = vsel %vm1446_vm12, %v1353_v40, %v1242_v2  ;;  %v402_v40 = vsel %vm401_vm14, %v398_v37, -inf }
0x1176   : > { %1454 = vrot.lane.b32.xlu0 %v1447_v41, %s2596_s7 }
0x11e7   : > { %v1356_v42 = vpop.permute.xlu1 %1355 }
0x11e8   : > { %2268 = vmatmul.mubr.msk.f32.vlgmr.msra.gmra.mrb[10].mxu0 %vm218_vm2, %v1356_v42  ;;  %v1455_v44 = vpop.permute.xlu0 %1454 }
0x11e9   : > { %2440 = vmatpush3.bf16.msra.mxu0 %v2666_v5  ;;  %2286 = vmatprep.mubr.msk.f32.mxu0 %vm2594_vm1, %v2595_v9  ;;  %v1457_v46 = vsel %vm218_vm2, %v1452_v43, %v1455_v44 }
0x11ea   : > { %2441 = vmatprep.subr.bf16.mxu0 %v2593_v4 }
0x11ed   : > { %2443 = vmatpush3.bf16.msra.mxu0 %v2676_v8 }
0x11ee   : > { %2444 = vmatprep.subr.bf16.mxu0 %v2593_v4 }
0x11f1   : > { %2446 = vmatpush3.bf16.msra.mxu0 %v2691_v13 }
0x11f2   : > { %2447 = vmatprep.subr.bf16.mxu0 %v2593_v4 }
0x11f5   : > { %2449 = vmatpush3.bf16.msra.mxu0 %v2701_v16 }
0x11f6   : > { %2468 = vmatprep.subr.bf16.mxu0 %v2593_v4 }
0x11f8   : > { %2287 = vmatmul.mubr.msk.f32.vlgmr.msra.gmra.mrb[12].mxu0 %vm220_vm3, %v1457_v46 }
0x11f9   : > { %2470 = vmatpush3.bf16.msra.mxu0 %v2747_v45  ;;  %2327 = vmatprep.mubr.msk.f32.mxu0 %vm2594_vm1, %v2595_v9 }
0x11fa   : > { %2471 = vmatprep.subr.bf16.mxu0 %v2593_v4 }
0x11fd   : > { %2473 = vmatpush3.bf16.msra.mxu0 %v2753_v47 }
0x12bb   : > { %v3004_v48 = vpop.f32.mrb[10].mxu0 }
0x12bc   : > { %v2269_v49 = vpop.f32.mrb[11].mxu0 }
0x12cb   : > { %v1527_v50 = vpop.f32.mrb[12].mxu0 }
0x12cc   : > { %v1528_v51 = vadd.f32 %v1527_v50, %v2717_v22  ;;  %v2288_v52 = vpop.f32.mrb[13].mxu0 }
0x12cd   : > { %v811_v52 = vadd.f32 %v2882_v0, %v3059_v26  ;;  %v1426_v0 = vadd.f32 %v3004_v48, %v3059_v26 }
0x12ce   : > { %v1531_v53 = vadd.f32 %v1528_v51, %v1528_v51 }
0x12d0   : > { %v1532_v54 = vsel %vm2720_vm6, %v1531_v53, %v1528_v51 }
0x12d1   : > { %v1966_v55 = vmul.f32 -1.442695, %v1532_v54 }
0x12d3   : > { %2525 = vpow2.f32 %v1966_v55  ;;  %v1016_v55 = vadd.f32 %v2923_v38, %v3059_v26 }
0x12dd   : > { %v2526_v45 = vpop.eup %2525 }
0x12de   : > { %v1536_v56 = vadd.f32 1.0, %v2526_v45  ;;  %v814_v45 = vsel %vm401_vm14, %v811_v52, -inf }
0x12e0   : > { %2527 = vrcp.f32 %v1536_v56 }
0x12ea   : > { %v2528_v57 = vpop.eup %2527 }
0x12eb   : > { %v1539_v58 = vadd.f32 %v2528_v57, %v2528_v57 }
0x12ed   : > { %v1967_v47 = vadd.f32 -1.0, %v1539_v58  ;;  %v1019_v58 = vsel %vm401_vm14, %v1016_v55, -inf }
0x12ef   : > { %v1541_v60 = vsel %vm2720_vm6, %v1967_v47, %v2528_v57  ;;  %v1221_v57 = vadd.f32 %v2964_v11, %v3059_v26 }
0x12f0   : > { %1544 = vrot.lane.b32.xlu1 %v1541_v60, %s2596_s7  ;;  %v1542_v1 = vmul.f32 %v1541_v60, %v1448_v63 }
0x12f1   : > { %v1224_v47 = vsel %vm401_vm14, %v1221_v57, -inf }
0x1362   : > { %v1545_v61 = vpop.permute.xlu1 %1544 }
0x1363   : > { %v1547_v62 = vmul.f32 %v1545_v61, %v1541_v60 }
0x1365   : > { %1549 = vrot.lane.b32.xlu0 %v1547_v62, %s2592_s10 }
0x13d7   : > { %v1550_v2 = vpop.permute.xlu0 %1549 }
0x13d8   : > { %v1552_v3 = vadd.f32 %v1550_v2, %v1542_v1 }
0x13da   : > { %2529 = vtanh.f32 %v1552_v3  ;;  %v3049_v31 = vsel %vm1651_vm13, %v1552_v3, %v1448_v63 }
0x13e4   : > { %v2530_v6 = vpop.eup %2529 }
0x13e5   : > { %1555 = vrot.lane.b32.xlu1 %v2530_v6, %s2596_s7 }
0x1457   : > { %v1556_v10 = vpop.permute.xlu1 %1555 }
0x1458   : > { %v1558_v12 = vmul.f32 %v1556_v10, %v1541_v60  ;;  %v1429_v60 = vsel %vm401_vm14, %v1426_v0, -inf }
0x145a   : > { %1560 = vrot.lane.b32.xlu0 %v1558_v12, %s2592_s10  ;;  %v3019_v14 = vsel %vm1651_vm13, %v1558_v12, %v1447_v41  ;;  %v609_v41 = vsel %vm401_vm14, %v606_v39, -inf }
0x145b   : > { %1659 = vrot.lane.b32.xlu1 %v3019_v14, %s2596_s7 }
0x14cc   : > { %v1561_v15 = vpop.permute.xlu0 %1560 }
0x14cd   : > { %2298 = vmatmul.mubr.msk.f32.vlgmr.msra.gmra.mrb[12].mxu1 %vm218_vm2, %v1561_v15  ;;  %v1660_v17 = vpop.permute.xlu1 %1659 }
0x14ce   : > { %2458 = vmatpush3.bf16.msra.mxu1 %v2666_v5  ;;  %2316 = vmatprep.mubr.msk.f32.mxu1 %vm2594_vm1, %v2595_v9  ;;  %v1657_v5 = vld [vmem:[%s1656_s21] sm:$0x1]  ;;  %vm1875_vm1 = vcmask (!%p1975_p4), 254976  }
0x14cf   : > { %2459 = vmatprep.subr.bf16.mxu1 %v2593_v4  ;;  %v1662_v9 = vsel %vm218_vm2, %v1657_v5, %v1660_v17 }
0x14d2   : > { %2461 = vmatpush3.bf16.msra.mxu1 %v2676_v8 }
0x14d3   : > { %2462 = vmatprep.subr.bf16.mxu1 %v2593_v4 }
0x14d6   : > { %2464 = vmatpush3.bf16.msra.mxu1 %v2691_v13 }
0x14d7   : > { %2465 = vmatprep.subr.bf16.mxu1 %v2593_v4 }
0x14da   : > { %2467 = vmatpush3.bf16.msra.mxu1 %v2701_v16 }
0x14dd   : > { %2317 = vmatmul.mubr.msk.f32.vlgmr.msra.gmra.mrb[14].mxu1 %vm220_vm3, %v1662_v9 }
0x15a0   : > { %v1630_v18 = vpop.f32.mrb[12].mxu1 }
0x15a1   : > { %v2299_v8 = vpop.f32.mrb[13].mxu1  ;;  %v1631_v38 = vadd.f32 %v1630_v18, %v3059_v26 }
0x15a3   : > { %v1634_v61 = vsel %vm401_vm14, %v1631_v38, -inf }
0x15b0   : > { %v1732_v19 = vpop.f32.mrb[14].mxu1 }
0x15b1   : > { %v1733_v20 = vadd.f32 %v1732_v19, %v2717_v22  ;;  %v2318_v21 = vpop.f32.mrb[15].mxu1 }
0x15b3   : > { %v1736_v23 = vadd.f32 %v1733_v20, %v1733_v20 }
0x15b5   : > { %v1737_v13 = vsel %vm2720_vm6, %v1736_v23, %v1733_v20 }
0x15b6   : > { %v1971_v24 = vmul.f32 -1.442695, %v1737_v13 }
0x15b8   : > { %2531 = vpow2.f32 %v1971_v24 }
0x15c2   : > { %v2532_v4 = vpop.eup %2531 }
0x15c3   : > { %v1741_v25 = vadd.f32 1.0, %v2532_v4 }
0x15c5   : > { %2533 = vrcp.f32 %v1741_v25 }
0x15cf   : > { %v2534_v16 = vpop.eup %2533 }
0x15d0   : > { %v1744_v27 = vadd.f32 %v2534_v16, %v2534_v16 }
0x15d2   : > { %v1972_v28 = vadd.f32 -1.0, %v1744_v27 }
0x15d4   : > { %v1746_v29 = vsel %vm2720_vm6, %v1972_v28, %v2534_v16 }
0x15d5   : > { %1749 = vrot.lane.b32.xlu0 %v1746_v29, %s2596_s7  ;;  %v1747_v33 = vmul.f32 %v1746_v29, %v3049_v31 }
0x1647   : > { %v1750_v30 = vpop.permute.xlu0 %1749 }
0x1648   : > { %v1752_v22 = vmul.f32 %v1750_v30, %v1746_v29 }
0x164a   : > { %1754 = vrot.lane.b32.xlu1 %v1752_v22, %s2592_s10 }
0x16bc   : > { %v1755_v34 = vpop.permute.xlu1 %1754 }
0x16bd   : > { %v3052_v35 = vadd.f32 %v1755_v34, %v1747_v33 }
0x16bf   : > { %2535 = vtanh.f32 %v3052_v35 }
0x16c9   : > { %v2536_v36 = vpop.eup %2535 }
0x16ca   : > { %1760 = vrot.lane.b32.xlu0 %v2536_v36, %s2596_s7  ;;  %s1854_s7 = scalar_select %p1853_p3, 1, 0 }
0x16e9   : > { %403 = vmax.xlane.f32.xlu0 %v402_v40 }
0x16ed   : > { %610 = vmax.xlane.f32.xlu0 %v609_v41 }
0x173c   : > { %v1761_v42 = vpop.permute.xlu0 %1760 }
0x173d   : > { %v3067_v43 = vmul.f32 %v1761_v42, %v1746_v29  ;;  %v1855_v42 = vstv %s1854_s7 }
0x173e   : > { %vm1856_vm15 = vcmp.eq.s32.totalorder %v1855_v42, 1 }
0x173f   : > { %1765 = vrot.lane.b32.xlu1 %v3067_v43, %s2592_s10 }
0x1776   : > { %v404_v44 = vpop.xlane.xlu0 %403 }
0x1777   : > { %v405_v46 = vsub.f32 %v398_v37, %v404_v44  ;;  %v1857_v44 = vsel %vm1856_vm15, %v3067_v43, %v3019_v14 }
0x1779   : > { %v406_v49 = vmul.f32 1.442695, %v405_v46 }
0x177a   : > { %v611_v59 = vpop.xlane.xlu0 %610 }
0x177b   : > { %2537 = vpow2.f32 %v406_v49  ;;  %v612_v50 = vsub.f32 %v606_v39, %v611_v59 }
0x177d   : > { %v613_v51 = vmul.f32 1.442695, %v612_v50 }
0x177f   : > { %2539 = vpow2.f32 %v613_v51 }
0x1785   : > { %v2538_v32 = vpop.eup %2537 }
0x1786   : > { %v408_v53 = vsel %vm401_vm14, %v2538_v32, 0.0 }
0x1787   : > { %409 = vadd.xlane.f32.xlu1 %v408_v53 }
0x1789   : > { %v2540_v54 = vpop.eup %2539 }
0x178a   : > { %v615_v56 = vsel %vm401_vm14, %v2540_v54, 0.0 }
0x178b   : > { %815 = vmax.xlane.f32.xlu1 %v814_v45  ;;  %616 = vadd.xlane.f32.xlu0 %v615_v56 }
0x178f   : > { %1020 = vmax.xlane.f32.xlu1 %v1019_v58 }
0x1793   : > { %1225 = vmax.xlane.f32.xlu1 %v1224_v47 }
0x1797   : > { %1430 = vmax.xlane.f32.xlu1 %v1429_v60 }
0x179b   : > { %1635 = vmax.xlane.f32.xlu1 %v1634_v61 }
0x17b1   : > { %v1766_v62 = vpop.permute.xlu1 %1765 }
0x17b2   : > { %2328 = vmatmul.mubr.msk.f32.vlgmr.msra.gmra.mrb[14].mxu0 %vm218_vm2, %v1766_v62 }
0x1814   : > { %v410_v11 = vpop.xlane.xlu1 %409 }
0x1815   : > { %2541 = vlog2.f32 %v410_v11 }
0x1818   : > { %v816_v63 = vpop.xlane.xlu1 %815  ;;  %v617_v1 = vpop.xlane.xlu0 %616 }
0x1819   : > { %v3088_v48 = vsub.f32 %v811_v52, %v816_v63  ;;  %2543 = vlog2.f32 %v617_v1 }
0x181b   : > { %v818_v2 = vmul.f32 1.442695, %v3088_v48 }
0x181c   : > { %v1021_v3 = vpop.xlane.xlu1 %1020 }
0x181d   : > { %2545 = vpow2.f32 %v818_v2  ;;  %v3091_v6 = vsub.f32 %v1016_v55, %v1021_v3 }
0x181f   : > { %v2542_v7 = vpop.eup %2541  ;;  %v1023_v10 = vmul.f32 1.442695, %v3091_v6 }
0x1820   : > { %v412_v12 = vmul.f32 0.6931472, %v2542_v7  ;;  %v1226_v15 = vpop.xlane.xlu1 %1225 }
0x1821   : > { %2547 = vpow2.f32 %v1023_v10  ;;  %v3094_v5 = vsub.f32 %v1221_v57, %v1226_v15 }
0x1822   : > { %v413_v17 = vsub.f32 %v405_v46, %v412_v12 }
0x1823   : > { %v2544_v9 = vpop.eup %2543  ;;  %v1228_v18 = vmul.f32 1.442695, %v3094_v5 }
0x1824   : > { %414 = vst [vmem:[%s2649_s28] sm:$0x1] %v413_v17  ;;  %v619_v8 = vmul.f32 0.6931472, %v2544_v9  ;;  %v1431_v19 = vpop.xlane.xlu1 %1430 }
0x1825   : > { %2549 = vpow2.f32 %v1228_v18  ;;  %v1432_v20 = vsub.f32 %v1426_v0, %v1431_v19 }
0x1826   : > { %v620_v21 = vsub.f32 %v612_v50, %v619_v8 }
0x1827   : > { %v2546_v23 = vpop.eup %2545  ;;  %v1433_v13 = vmul.f32 1.442695, %v1432_v20 }
0x1828   : > { %1944 = vst [vmem:[%s2649_s28 + $0x1] sm:$0x1] %v620_v21  ;;  %v1636_v24 = vpop.xlane.xlu1 %1635  ;;  %v820_v4 = vsel %vm401_vm14, %v2546_v23, 0.0 }
0x1829   : > { %2551 = vpow2.f32 %v1433_v13  ;;  %v1637_v25 = vsub.f32 %v1631_v38, %v1636_v24  ;;  %821 = vadd.xlane.f32.xlu0 %v820_v4 }
0x182b   : > { %v2548_v16 = vpop.eup %2547  ;;  %v1638_v27 = vmul.f32 1.442695, %v1637_v25 }
0x182c   : > { %v1025_v28 = vsel %vm401_vm14, %v2548_v16, 0.0 }
0x182d   : > { %2553 = vpow2.f32 %v1638_v27  ;;  %1026 = vadd.xlane.f32.xlu0 %v1025_v28 }
0x182f   : > { %v2550_v29 = vpop.eup %2549 }
0x1830   : > { %v1230_v30 = vsel %vm401_vm14, %v2550_v29, 0.0 }
0x1831   : > { %1231 = vadd.xlane.f32.xlu0 %v1230_v30 }
0x1833   : > { %v2552_v22 = vpop.eup %2551 }
0x1834   : > { %v1435_v33 = vsel %vm401_vm14, %v2552_v22, 0.0 }
0x1835   : > { %1436 = vadd.xlane.f32.xlu0 %v1435_v33 }
0x1837   : > { %v2554_v34 = vpop.eup %2553 }
0x1838   : > { %v1640_v36 = vsel %vm401_vm14, %v2554_v34, 0.0 }
0x1839   : > { %1641 = vadd.xlane.f32.xlu0 %v1640_v36 }
0x1885   : > { %v1835_v37 = vpop.f32.mrb[14].mxu0 }
0x1886   : > { %v1836_v39 = vadd.f32 %v1835_v37, %v3059_v26  ;;  %v2329_v40 = vpop.f32.mrb[15].mxu0 }
0x1888   : > { %v1839_v41 = vsel %vm401_vm14, %v1836_v39, -inf }
0x1889   : > { %1840 = vmax.xlane.f32.xlu1 %v1839_v41 }
0x189a   : > { %1860 = vrot.lane.b32.xlu1 %v1857_v44, %s2592_s10 }
0x18b6   : > { %v822_v46 = vpop.xlane.xlu0 %821 }
0x18b7   : > { %2555 = vlog2.f32 %v822_v46 }
0x18ba   : > { %v1027_v49 = vpop.xlane.xlu0 %1026 }
0x18bb   : > { %2557 = vlog2.f32 %v1027_v49 }
0x18be   : > { %v1232_v26 = vpop.xlane.xlu0 %1231 }
0x18bf   : > { %2559 = vlog2.f32 %v1232_v26 }
0x18c1   : > { %v2556_v59 = vpop.eup %2555 }
0x18c2   : > { %v824_v50 = vmul.f32 0.6931472, %v2556_v59  ;;  %v1437_v51 = vpop.xlane.xlu0 %1436 }
0x18c3   : > { %2561 = vlog2.f32 %v1437_v51 }
0x18c4   : > { %v825_v32 = vsub.f32 %v3088_v48, %v824_v50  ;;  %v1858_v48 = vsel %vm1856_vm15, %v3052_v35, %v3049_v31 }
0x18c5   : > { %v2558_v52 = vpop.eup %2557 }
0x18c6   : > { %1949 = vst [vmem:[%s2649_s28 + $0x2] sm:$0x1] %v825_v32  ;;  %v1029_v14 = vmul.f32 0.6931472, %v2558_v52  ;;  %v1642_v43 = vpop.xlane.xlu0 %1641 }
0x18c7   : > { %2563 = vlog2.f32 %v1642_v43 }
0x18c8   : > { %v1030_v53 = vsub.f32 %v3091_v6, %v1029_v14 }
0x18c9   : > { %v2560_v54 = vpop.eup %2559 }
0x18ca   : > { %1954 = vst [vmem:[%s2649_s28 + $0x3] sm:$0x1] %v1030_v53  ;;  %v1234_v55 = vmul.f32 0.6931472, %v2560_v54 }
0x18cc   : > { %v1235_v45 = vsub.f32 %v3094_v5, %v1234_v55 }
0x18cd   : > { %v2562_v56 = vpop.eup %2561 }
0x18ce   : > { %1959 = vst [vmem:[%s2649_s28 + $0x4] sm:$0x1] %v1235_v45  ;;  %v1439_v57 = vmul.f32 0.6931472, %v2562_v56 }
0x18d0   : > { %v1440_v58 = vsub.f32 %v1432_v20, %v1439_v57 }
0x18d1   : > { %v2564_v0 = vpop.eup %2563 }
0x18d2   : > { %1964 = vst [vmem:[%s2649_s28 + $0x5] sm:$0x1] %v1440_v58  ;;  %v1644_v47 = vmul.f32 0.6931472, %v2564_v0 }
0x18d4   : > { %v1645_v38 = vsub.f32 %v1637_v25, %v1644_v47 }
0x18d6   : > { %1969 = vst [vmem:[%s2649_s28 + $0x6] sm:$0x1] %v1645_v38 }
0x1916   : > { %v1841_v60 = vpop.xlane.xlu1 %1840 }
0x1917   : > { %v1842_v61 = vsub.f32 %v1836_v39, %v1841_v60 }
0x1919   : > { %v1843_v62 = vmul.f32 1.442695, %v1842_v61 }
0x191a   : > { %v1861_v11 = vpop.permute.xlu1 %1860 }
0x191b   : > { %2565 = vpow2.f32 %v1843_v62  ;;  %1864 = vst.msk [vmem:[#allocation2] sm:$0x1] %vm1863_vm0, %v1861_v11 }
0x1925   : > { %v2566_v63 = vpop.eup %2565 }
0x1926   : > { %v1845_v1 = vsel %vm401_vm14, %v2566_v63, 0.0 }
0x1927   : > { %1846 = vadd.xlane.f32.xlu0 %v1845_v1 }
0x193d   : > { %1866 = vrot.lane.b32.xlu0 %v1858_v48, %s2597_s8 }
0x19b4   : > { %v1847_v2 = vpop.xlane.xlu0 %1846 }
0x19b5   : > { %2567 = vlog2.f32 %v1847_v2 }
0x19b8   : > { %v1867_v3 = vpop.permute.xlu0 %1866 }
0x19b9   : > { %1869 = vst.msk [vmem:[#allocation2 + $0x1] sm:$0x1] %vm1863_vm0, %v1867_v3 }
0x19be   : > { %1873 = sbr.rel (%p1975_p4) target bundleno = 6597 (0x19c5), region = 40 }
0x19bf   : > { %v2568_v6 = vpop.eup %2567 }
0x19c0   : > { %v1849_v7 = vmul.f32 0.6931472, %v2568_v6  ;;  %v1874_v12 = vld [vmem:[#allocation2] sm:$0x3] (!%p1975_p4) }
0x19c1   : > { %1876 = vst.msk [vmem:[%s3138_s5] sm:$0x3] (!%p1975_p4), %vm1875_vm1, %v1874_v12 }
0x19c2   : > { %v1850_v10 = vsub.f32 %v1842_v61, %v1849_v7 }
0x19c4   : > { %1974 = vst [vmem:[%s2649_s28 + $0x7] sm:$0x1] %v1850_v10 }
0x19c5 PF: > { %s22_s23 = sadd.s32 1, %s2589_s23  }
0x19c6   : > { %p19_p5 = scmp.ge.s32.totalorder %s22_s23, 4  }
0x19c8   :  { %21 = sbr.rel (!%p19_p5) target bundleno = 16 (0x10), region = 90 }

</bundles_post_ra>
